<compile_context>
chip_gen: v7x
topology: tpu7x:2x2x1
jax: 0.10.0
libtpu: 0.0.40
codegen_flags: <defaults>
</compile_context>

<pallas_src>
import functools

import jax
import jax.numpy as jnp
from jax.experimental import pallas as pl
from jax.experimental.pallas import tpu as pltpu


# ----------------------------------------------------------------------------
# Kernels
# ----------------------------------------------------------------------------

def _shuffle_lane_dense_kernel(x_ref, o_ref, *, th, r, w):
    """Depth-to-space for one (n, c_out) slab and one H-tile, lane-dense output.

    x_ref: (r, r, TH, W)   indexed (ry, rx, h, w)
    o_ref: (TH, r, W*r)    indexed (h, ry, w*r + rx)   -- minor dim is W*r
    """
    # Static unroll over the H rows of the tile (th <= 64 by construction).
    # Per row: one batched minor-2 transpose (ry-batched (rx, w) -> (w, rx)) on
    # the XLU, then collapse the trailing (w, rx) dims so the store is a dense,
    # unmasked, full-lane write.
    for h in range(th):
        blk = jnp.swapaxes(x_ref[:, :, h, :], 1, 2)   # (r, W, r): [ry, w, rx]
        o_ref[h] = blk.reshape(r, w * r)              # lane-dense (w, rx) merge


def _shuffle_padded_kernel(x_ref, o_ref, *, th):
    """Fallback (proven to lower everywhere): output keeps rx as the minor dim.

    x_ref: (r, r, TH, W)   indexed (ry, rx, h, w)
    o_ref: (TH, r, W, r)   indexed (h, ry, w, rx)
    """
    for h in range(th):
        o_ref[h] = jnp.swapaxes(x_ref[:, :, h, :], 1, 2)   # (r, W, r)


# ----------------------------------------------------------------------------
# Tiling / pallas_call construction
# ----------------------------------------------------------------------------

def _pick_tile_h(H, W, r, itemsize, lane_dense):
    """Largest H-tile that divides H, respects sublane packing, fits the budget."""
    # Sublane granularity: 8 rows for 32-bit, 16 for 16-bit, 32 for 8-bit dtypes.
    step = 8 * max(1, 4 // max(1, itemsize))
    if H % step != 0:
        step = 8
    if H % step != 0:
        return H                                   # full-extent block: always legal
    # Logical input-block byte budget (lane-dense path can afford big tiles; the
    # padded fallback's output buffer is ~16x the logical size, so keep it small).
    budget = (4 << 20) if lane_dense else (512 << 10)
    cap = 64 if lane_dense else 32                 # bound the static unroll
    per_row = r * r * W * itemsize
    best = step
    t = step
    while t <= H:
        if H % t == 0 and t <= cap and t * per_row <= budget:
            best = t
        t += step
    return best


def _build_shuffle_call(NB, r, H, W, dtype, *, lane_dense):
    itemsize = dtype.itemsize
    th = _pick_tile_h(H, W, r, itemsize, lane_dense)
    total_bytes = NB * r * r * H * W * itemsize

    in_spec = pl.BlockSpec((None, r, r, th, W), lambda b, t: (b, 0, 0, t, 0))

    if lane_dense:
        kernel = functools.partial(_shuffle_lane_dense_kernel, th=th, r=r, w=W)
        out_shape = jax.ShapeDtypeStruct((NB, H, r, W * r), dtype)
        out_spec = pl.BlockSpec((None, th, r, W * r), lambda b, t: (b, t, 0, 0))
    else:
        kernel = functools.partial(_shuffle_padded_kernel, th=th)
        out_shape = jax.ShapeDtypeStruct((NB, H, r, W, r), dtype)
        out_spec = pl.BlockSpec((None, th, r, W, r), lambda b, t: (b, t, 0, 0, 0))

    return pl.pallas_call(
        kernel,
        out_shape=out_shape,
        grid=(NB, H // th),
        in_specs=[in_spec],
        out_specs=out_spec,
        compiler_params=pltpu.CompilerParams(
            dimension_semantics=("parallel", "parallel"),
            vmem_limit_bytes=32 * 1024 * 1024),
        cost_estimate=pl.CostEstimate(
            flops=0, transcendentals=0, bytes_accessed=2 * total_bytes),
    )


@functools.lru_cache(maxsize=None)
def _get_shuffle_call(NB, r, H, W, dtype):
    """Select (once per shape/dtype) the lane-dense kernel, else the fallback."""
    sds = jax.ShapeDtypeStruct((NB, r, r, H, W), dtype)
    primary = jax.jit(_build_shuffle_call(NB, r, H, W, dtype, lane_dense=True))
    try:
        primary.lower(sds).compile()
        # Value-check the lane-dense path once on a deterministic input (cheap,
        # one-time): guards against any relayout corner case in the compiler.
        n_el = NB * r * r * H * W
        x_probe = (jnp.arange(n_el) % 101).astype(dtype).reshape(NB, r, r, H, W)
        ref = jnp.transpose(x_probe, (0, 3, 1, 4, 2)).reshape(NB, H, r, W * r)
        if not bool(jnp.array_equal(primary(x_probe), ref)):
            raise ValueError("lane-dense pixel-shuffle kernel mismatch")
        return primary
    except Exception:
        # TODO(synk): the in-kernel (w, rx) lane merge needs a minor-dims reshape
        # that some Mosaic releases reject; fall back to the padded-lane layout.
        return jax.jit(_build_shuffle_call(NB, r, H, W, dtype, lane_dense=False))


# ----------------------------------------------------------------------------
# Wrapper (all host-side reshapes are free row-major views)
# ----------------------------------------------------------------------------

def pixel_shuffle(feats, upscale):
    """CAIN PixelShuffle with scale = upscale (>= 1). feats: (N, C_out*r*r, H, W)."""
    N, C_in, H, W = feats.shape
    r = int(upscale)
    assert r >= 1 and C_in % (r * r) == 0, (C_in, r)
    if r == 1:
        return feats
    C_out = C_in // (r * r)
    NB = N * C_out

    # Free reshape: split channels as (C_out, r, r) and fold (N, C_out).
    x5 = feats.reshape(NB, r, r, H, W)
    call = _get_shuffle_call(NB, r, H, W, feats.dtype)
    out = call(x5)
    # Free reshape: (NB, H, r, W*r) or (NB, H, r, W, r) -> (N, C_out, H*r, W*r).
    return out.reshape(N, C_out, H * r, W * r)


def decoder_forward(feats, depth=3):
    """CAIN Decoder.forward: pixel shuffle with upscale factor 2**depth."""
    return pixel_shuffle(feats, 2 ** depth)


# ----------------------------------------------------------------------------
# Pure-JAX reference (mirrors torch.nn.PixelShuffle)
# ----------------------------------------------------------------------------

def pixel_shuffle_reference(feats, upscale):
    N, C_in, H, W = feats.shape
    r = int(upscale)
    C_out = C_in // (r * r)
    x = feats.reshape(N, C_out, r, r, H, W)
    x = jnp.transpose(x, (0, 1, 4, 2, 5, 3))
    return x.reshape(N, C_out, H * r, W * r)


# ----------------------------------------------------------------------------
# Main
# ----------------------------------------------------------------------------

if __name__ == "__main__":
    DEPTH = 3
    R = 2 ** DEPTH                        # 8
    N, C_OUT, H, W = 2, 3, 8, 8
    C_IN = C_OUT * R * R                  # 192, matches CAIN's feature width

    key = jax.random.PRNGKey(0)
    feats = jax.random.normal(key, (N, C_IN, H, W), jnp.float32)

    out = jax.block_until_ready(decoder_forward(feats, depth=DEPTH))

    expected_shape = (N, C_OUT, H * R, W * R)
    assert out.shape == expected_shape, (out.shape, expected_shape)
    assert bool(jnp.all(jnp.isfinite(out)))

    ref = pixel_shuffle_reference(feats, R)
    assert bool(jnp.array_equal(out, ref)), "pixel shuffle mismatch vs reference"

    print("KERNEL_OK")
</pallas_src>

<mosaic_0001>
module attributes {stable_mosaic.version = 11 : i64} {
  func.func @_shuffle_padded_kernel(%arg0: i32, %arg1: i32, %arg2: memref<1x8x8x8x8xf32, #tpu.memory_space<vmem>>, %arg3: memref<1x8x8x8x8xf32, #tpu.memory_space<vmem>>) attributes {dimension_semantics = [#tpu.dimension_semantics<parallel>, #tpu.dimension_semantics<parallel>], iteration_bounds = array<i64: 6, 1>, scalar_prefetch = 0 : i64, scratch_operands = 0 : i64, tpu.core_type = #tpu.core_type<tc>, window_params = [{transform_indices = @transform_0, window_bounds = array<i64: 1, 8, 8, 8, 8>}, {transform_indices = @transform_1, window_bounds = array<i64: 1, 8, 8, 8, 8>}]} {
    %c0 = arith.constant 0 : index
    %c0_0 = arith.constant 0 : index
    %c0_1 = arith.constant 0 : index
    %c0_2 = arith.constant 0 : index
    %c0_3 = arith.constant 0 : index
    %0 = vector.load %arg2[%c0, %c0_0, %c0_1, %c0_2, %c0_3] : memref<1x8x8x8x8xf32, #tpu.memory_space<vmem>>, vector<1x8x8x1x8xf32>
    %1 = vector.shape_cast %0 : vector<1x8x8x1x8xf32> to vector<8x8x8xf32>
    %2 = tpu.transpose %1, [0, 2, 1] : vector<8x8x8xf32> -> vector<8x8x8xf32>
    %c0_4 = arith.constant 0 : index
    %c0_5 = arith.constant 0 : index
    %c0_6 = arith.constant 0 : index
    %c0_7 = arith.constant 0 : index
    %c0_8 = arith.constant 0 : index
    %3 = vector.load %arg3[%c0_4, %c0_5, %c0_6, %c0_7, %c0_8] : memref<1x8x8x8x8xf32, #tpu.memory_space<vmem>>, vector<1x1x8x8x8xf32>
    %4 = vector.shape_cast %3 : vector<1x1x8x8x8xf32> to vector<8x8x8xf32>
    %5 = vector.shape_cast %2 : vector<8x8x8xf32> to vector<1x1x8x8x8xf32>
    tpu.vector_store %arg3[%c0_4, %c0_5, %c0_6, %c0_7, %c0_8], %5 {strides = array<i32>} : memref<1x8x8x8x8xf32, #tpu.memory_space<vmem>>, vector<1x1x8x8x8xf32>,
    %c0_9 = arith.constant 0 : index
    %c0_10 = arith.constant 0 : index
    %c0_11 = arith.constant 0 : index
    %c1 = arith.constant 1 : index
    %c0_12 = arith.constant 0 : index
    %6 = vector.load %arg2[%c0_9, %c0_10, %c0_11, %c1, %c0_12] : memref<1x8x8x8x8xf32, #tpu.memory_space<vmem>>, vector<1x8x8x1x8xf32>
    %7 = vector.shape_cast %6 : vector<1x8x8x1x8xf32> to vector<8x8x8xf32>
    %8 = tpu.transpose %7, [0, 2, 1] : vector<8x8x8xf32> -> vector<8x8x8xf32>
    %c0_13 = arith.constant 0 : index
    %c1_14 = arith.constant 1 : index
    %c0_15 = arith.constant 0 : index
    %c0_16 = arith.constant 0 : index
    %c0_17 = arith.constant 0 : index
    %9 = vector.load %arg3[%c0_13, %c1_14, %c0_15, %c0_16, %c0_17] : memref<1x8x8x8x8xf32, #tpu.memory_space<vmem>>, vector<1x1x8x8x8xf32>
    %10 = vector.shape_cast %9 : vector<1x1x8x8x8xf32> to vector<8x8x8xf32>
    %11 = vector.shape_cast %8 : vector<8x8x8xf32> to vector<1x1x8x8x8xf32>
    tpu.vector_store %arg3[%c0_13, %c1_14, %c0_15, %c0_16, %c0_17], %11 {strides = array<i32>} : memref<1x8x8x8x8xf32, #tpu.memory_space<vmem>>, vector<1x1x8x8x8xf32>,
    %c0_18 = arith.constant 0 : index
    %c0_19 = arith.constant 0 : index
    %c0_20 = arith.constant 0 : index
    %c2 = arith.constant 2 : index
    %c0_21 = arith.constant 0 : index
    %12 = vector.load %arg2[%c0_18, %c0_19, %c0_20, %c2, %c0_21] : memref<1x8x8x8x8xf32, #tpu.memory_space<vmem>>, vector<1x8x8x1x8xf32>
    %13 = vector.shape_cast %12 : vector<1x8x8x1x8xf32> to vector<8x8x8xf32>
    %14 = tpu.transpose %13, [0, 2, 1] : vector<8x8x8xf32> -> vector<8x8x8xf32>
    %c0_22 = arith.constant 0 : index
    %c2_23 = arith.constant 2 : index
    %c0_24 = arith.constant 0 : index
    %c0_25 = arith.constant 0 : index
    %c0_26 = arith.constant 0 : index
    %15 = vector.load %arg3[%c0_22, %c2_23, %c0_24, %c0_25, %c0_26] : memref<1x8x8x8x8xf32, #tpu.memory_space<vmem>>, vector<1x1x8x8x8xf32>
    %16 = vector.shape_cast %15 : vector<1x1x8x8x8xf32> to vector<8x8x8xf32>
    %17 = vector.shape_cast %14 : vector<8x8x8xf32> to vector<1x1x8x8x8xf32>
    tpu.vector_store %arg3[%c0_22, %c2_23, %c0_24, %c0_25, %c0_26], %17 {strides = array<i32>} : memref<1x8x8x8x8xf32, #tpu.memory_space<vmem>>, vector<1x1x8x8x8xf32>,
    %c0_27 = arith.constant 0 : index
    %c0_28 = arith.constant 0 : index
    %c0_29 = arith.constant 0 : index
    %c3 = arith.constant 3 : index
    %c0_30 = arith.constant 0 : index
    %18 = vector.load %arg2[%c0_27, %c0_28, %c0_29, %c3, %c0_30] : memref<1x8x8x8x8xf32, #tpu.memory_space<vmem>>, vector<1x8x8x1x8xf32>
    %19 = vector.shape_cast %18 : vector<1x8x8x1x8xf32> to vector<8x8x8xf32>
    %20 = tpu.transpose %19, [0, 2, 1] : vector<8x8x8xf32> -> vector<8x8x8xf32>
    %c0_31 = arith.constant 0 : index
    %c3_32 = arith.constant 3 : index
    %c0_33 = arith.constant 0 : index
    %c0_34 = arith.constant 0 : index
    %c0_35 = arith.constant 0 : index
    %21 = vector.load %arg3[%c0_31, %c3_32, %c0_33, %c0_34, %c0_35] : memref<1x8x8x8x8xf32, #tpu.memory_space<vmem>>, vector<1x1x8x8x8xf32>
    %22 = vector.shape_cast %21 : vector<1x1x8x8x8xf32> to vector<8x8x8xf32>
    %23 = vector.shape_cast %20 : vector<8x8x8xf32> to vector<1x1x8x8x8xf32>
    tpu.vector_store %arg3[%c0_31, %c3_32, %c0_33, %c0_34, %c0_35], %23 {strides = array<i32>} : memref<1x8x8x8x8xf32, #tpu.memory_space<vmem>>, vector<1x1x8x8x8xf32>,
    %c0_36 = arith.constant 0 : index
    %c0_37 = arith.constant 0 : index
    %c0_38 = arith.constant 0 : index
    %c4 = arith.constant 4 : index
    %c0_39 = arith.constant 0 : index
    %24 = vector.load %arg2[%c0_36, %c0_37, %c0_38, %c4, %c0_39] : memref<1x8x8x8x8xf32, #tpu.memory_space<vmem>>, vector<1x8x8x1x8xf32>
    %25 = vector.shape_cast %24 : vector<1x8x8x1x8xf32> to vector<8x8x8xf32>
    %26 = tpu.transpose %25, [0, 2, 1] : vector<8x8x8xf32> -> vector<8x8x8xf32>
    %c0_40 = arith.constant 0 : index
    %c4_41 = arith.constant 4 : index
    %c0_42 = arith.constant 0 : index
    %c0_43 = arith.constant 0 : index
    %c0_44 = arith.constant 0 : index
    %27 = vector.load %arg3[%c0_40, %c4_41, %c0_42, %c0_43, %c0_44] : memref<1x8x8x8x8xf32, #tpu.memory_space<vmem>>, vector<1x1x8x8x8xf32>
    %28 = vector.shape_cast %27 : vector<1x1x8x8x8xf32> to vector<8x8x8xf32>
    %29 = vector.shape_cast %26 : vector<8x8x8xf32> to vector<1x1x8x8x8xf32>
    tpu.vector_store %arg3[%c0_40, %c4_41, %c0_42, %c0_43, %c0_44], %29 {strides = array<i32>} : memref<1x8x8x8x8xf32, #tpu.memory_space<vmem>>, vector<1x1x8x8x8xf32>,
    %c0_45 = arith.constant 0 : index
    %c0_46 = arith.constant 0 : index
    %c0_47 = arith.constant 0 : index
    %c5 = arith.constant 5 : index
    %c0_48 = arith.constant 0 : index
    %30 = vector.load %arg2[%c0_45, %c0_46, %c0_47, %c5, %c0_48] : memref<1x8x8x8x8xf32, #tpu.memory_space<vmem>>, vector<1x8x8x1x8xf32>
    %31 = vector.shape_cast %30 : vector<1x8x8x1x8xf32> to vector<8x8x8xf32>
    %32 = tpu.transpose %31, [0, 2, 1] : vector<8x8x8xf32> -> vector<8x8x8xf32>
    %c0_49 = arith.constant 0 : index
    %c5_50 = arith.constant 5 : index
    %c0_51 = arith.constant 0 : index
    %c0_52 = arith.constant 0 : index
    %c0_53 = arith.constant 0 : index
    %33 = vector.load %arg3[%c0_49, %c5_50, %c0_51, %c0_52, %c0_53] : memref<1x8x8x8x8xf32, #tpu.memory_space<vmem>>, vector<1x1x8x8x8xf32>
    %34 = vector.shape_cast %33 : vector<1x1x8x8x8xf32> to vector<8x8x8xf32>
    %35 = vector.shape_cast %32 : vector<8x8x8xf32> to vector<1x1x8x8x8xf32>
    tpu.vector_store %arg3[%c0_49, %c5_50, %c0_51, %c0_52, %c0_53], %35 {strides = array<i32>} : memref<1x8x8x8x8xf32, #tpu.memory_space<vmem>>, vector<1x1x8x8x8xf32>,
    %c0_54 = arith.constant 0 : index
    %c0_55 = arith.constant 0 : index
    %c0_56 = arith.constant 0 : index
    %c6 = arith.constant 6 : index
    %c0_57 = arith.constant 0 : index
    %36 = vector.load %arg2[%c0_54, %c0_55, %c0_56, %c6, %c0_57] : memref<1x8x8x8x8xf32, #tpu.memory_space<vmem>>, vector<1x8x8x1x8xf32>
    %37 = vector.shape_cast %36 : vector<1x8x8x1x8xf32> to vector<8x8x8xf32>
    %38 = tpu.transpose %37, [0, 2, 1] : vector<8x8x8xf32> -> vector<8x8x8xf32>
    %c0_58 = arith.constant 0 : index
    %c6_59 = arith.constant 6 : index
    %c0_60 = arith.constant 0 : index
    %c0_61 = arith.constant 0 : index
    %c0_62 = arith.constant 0 : index
    %39 = vector.load %arg3[%c0_58, %c6_59, %c0_60, %c0_61, %c0_62] : memref<1x8x8x8x8xf32, #tpu.memory_space<vmem>>, vector<1x1x8x8x8xf32>
    %40 = vector.shape_cast %39 : vector<1x1x8x8x8xf32> to vector<8x8x8xf32>
    %41 = vector.shape_cast %38 : vector<8x8x8xf32> to vector<1x1x8x8x8xf32>
    tpu.vector_store %arg3[%c0_58, %c6_59, %c0_60, %c0_61, %c0_62], %41 {strides = array<i32>} : memref<1x8x8x8x8xf32, #tpu.memory_space<vmem>>, vector<1x1x8x8x8xf32>,
    %c0_63 = arith.constant 0 : index
    %c0_64 = arith.constant 0 : index
    %c0_65 = arith.constant 0 : index
    %c7 = arith.constant 7 : index
    %c0_66 = arith.constant 0 : index
    %42 = vector.load %arg2[%c0_63, %c0_64, %c0_65, %c7, %c0_66] : memref<1x8x8x8x8xf32, #tpu.memory_space<vmem>>, vector<1x8x8x1x8xf32>
    %43 = vector.shape_cast %42 : vector<1x8x8x1x8xf32> to vector<8x8x8xf32>
    %44 = tpu.transpose %43, [0, 2, 1] : vector<8x8x8xf32> -> vector<8x8x8xf32>
    %c0_67 = arith.constant 0 : index
    %c7_68 = arith.constant 7 : index
    %c0_69 = arith.constant 0 : index
    %c0_70 = arith.constant 0 : index
    %c0_71 = arith.constant 0 : index
    %45 = vector.load %arg3[%c0_67, %c7_68, %c0_69, %c0_70, %c0_71] : memref<1x8x8x8x8xf32, #tpu.memory_space<vmem>>, vector<1x1x8x8x8xf32>
    %46 = vector.shape_cast %45 : vector<1x1x8x8x8xf32> to vector<8x8x8xf32>
    %47 = vector.shape_cast %44 : vector<8x8x8xf32> to vector<1x1x8x8x8xf32>
    tpu.vector_store %arg3[%c0_67, %c7_68, %c0_69, %c0_70, %c0_71], %47 {strides = array<i32>} : memref<1x8x8x8x8xf32, #tpu.memory_space<vmem>>, vector<1x1x8x8x8xf32>,
    return
  }
  func.func @transform_0(%arg0: i32, %arg1: i32) -> (i32, i32, i32, i32, i32) {
    %c0_i32 = arith.constant 0 : i32
    %c0_i32_0 = arith.constant 0 : i32
    %c0_i32_1 = arith.constant 0 : i32
    %c0_i32_2 = arith.constant 0 : i32
    return %arg0, %c0_i32, %c0_i32_0, %arg1, %c0_i32_1 : i32, i32, i32, i32, i32
  }
  func.func @transform_1(%arg0: i32, %arg1: i32) -> (i32, i32, i32, i32, i32) {
    %c0_i32 = arith.constant 0 : i32
    %c0_i32_0 = arith.constant 0 : i32
    %c0_i32_1 = arith.constant 0 : i32
    %c0_i32_2 = arith.constant 0 : i32
    return %arg0, %arg1, %c0_i32, %c0_i32_0, %c0_i32_1 : i32, i32, i32, i32, i32
  }
}

</mosaic_0001>

<bundles_post_ra>
// kernel: tpu_custom_call.1
= control target key start
LH: loop header
LB: loop body
LE: loop exit
PB: predicated region body
PF: predicated region fallthrough
CT: control target
= control target key end

     0   :  { %6 = vsyncpa [#allocation3], 0  ;;  %s5991_s0 = inlined_call_operand.hbm [shape: f32[6,8,8,8,8], index: 0, kind: input, shape index: {}]   ;;  %s5992_s1 = inlined_call_operand.hbm [shape: f32[6,8,8,8,8], index: 1, kind: output, shape index: {}]  }
   0x1   :  { %8 = vsyncpa [#allocation3 + $0x1], 0 }
   0x2   :  { %9 = vsyncpa [#allocation4], 0 }
   0x3   :  { %11 = vsyncpa [#allocation4 + $0x1], 0  ;;  %s4637_s6 = smov 0   ;;  %s4639_s7 = smov 0  }
   0x4   :  { %s4641_s8 = smov 0   ;;  %s4643_s9 = smov 0  }
   0x5   :  { %s4645_s10 = smov 0   ;;  %s4647_s11 = smov 0  }
   0x6 LB: > { %s4367_s12 = sadd.s32 4294967295, %s4619_s11   ;;  %s4368_s13 = sadd.s32 4294967294, %s4619_s11   ;;  %s4619_s11 = sphi %s4647_s11, %s17_s11   ;;  %s4615_s10 = sphi %s4645_s10, %s6006_s10   ;;  %s4611_s9 = sphi %s4643_s9, %s6005_s9   ;;  %s4607_s8 = sphi %s4641_s8, %s6004_s8   ;;  %s4603_s7 = sphi %s4639_s7, %s6003_s7   ;;  %s4599_s6 = sphi %s4637_s6, %s6002_s6  }
   0x7   : > { %s29_s14 = sadd.s32 1, %s4615_s10  ;;  %s38_s15 = sadd.s32 1, %s4607_s8 }
   0x8   : > { %p31_p0 = scmp.ge.s32.totalorder %s29_s14, 6  ;;  %p45_p1 = scmp.ne.s32.totalorder %s4607_s8, %s4603_s7 }
   0x9   : > { %p46_p2 = scmp.eq.s32.totalorder %s4619_s11, 0  ;;  %p51_p3 = scmp.ne.s32.totalorder %s4603_s7, %s4599_s6 }
   0xa   : > { %s6008_s14 = smov (%p31_p0, %s29_s14), 0  ;;  %p52_p5 = scmp.eq.s32.totalorder %s4367_s12, 0 }
   0xb   : > { %p4678_p4 = por %p46_p2, %p45_p1  ;;  %s33_s17 = ssub.s32 %s4615_s10, %s6008_s14 }
   0xc   : > { %p77_p6 = scmp.eq.s32.totalorder %s4367_s12, 5  ;;  %p36_p7 = scmp.eq.s32.totalorder %s33_s17, 0 }
   0xd   : > { %p4684_p8 = por %p52_p5, %p51_p3  ;;  %p83_p10 = scmp.eq.s32.totalorder %s4368_s13, 5 }
   0xe   : > { %p4688_p9 = por %p77_p6, %p45_p1  ;;  %p4452_p12 = scmp.lt.s32.totalorder %s4619_s11, 6 }
   0xf   : > { %s4693_s20 = scalar_select %p36_p7, %s4607_s8, %s38_s15  }
  0x10   : > { %s5996_s19 = scalar_select %p4688_p9, 1, 0 }
  0x11   : > { %p4695_p11 = por %p83_p10, %p51_p3  ;;  %s103_s22 = sand.u32 1, %s4607_s8  }
  0x12   : > { %s4371_s23 = sshll.u32 %s103_s22, 9  ;;  %s4438_s24 = sshll.u32 %s4615_s10, 13 }
  0x13   : > { %s5997_s21 = scalar_select %p4695_p11, 1, 0 }
  0x14   : > { %s4705_s27 = scalar_lea.hbm %s5991_s0, %s4438_s24  ;;  %s107_s28 = scalar_lea.vmem [#allocation2], %s4371_s23 }
  0x15   : > { %s115_s29 = sshll.u32 %s107_s28, 4  ;;  %p4711_p13 = pnand %p4452_p12, %p4678_p4  ;;  %s4707_s29 = int_to_ptr.vmem [resolvable:$true] %s115_s29 }
  0x16   : > { %s4716_s2 = scalar_lea.sflag [#allocation3], %s103_s22  ;;  %s4507_s3 = scalar_lea.hbm %s4705_s27, 8192 }
  0x17   : > { %p4508_p1 = scmp.ne.s32.totalorder %s4705_s27, %s4507_s3  ;;  %p4509_p2 = pneg %p4711_p13 }
  0x18   : > { %s4512_s12 = scalar_lea.hbm %s5991_s0, 49152  ;;  %p4513_p4 = scmp.lt.u32.totalorder %s4705_s27, %s5991_s0 }
  0x19   : > { %p4510_p3 = pnand %p4509_p2, %p4508_p1  ;;  %p4514_p6 = scmp.lt.u32.totalorder %s4512_s12, %s4507_s3 }
  0x1a   : > { %p4516_p10 = scmp.lt.u32.totalorder %s4507_s3, %s4705_s27 }
  0x1b   : > { %p4511_p5 = pneg %p4510_p3  ;;  %p4515_p7 = por %p4514_p6, %p4513_p4 }
  0x1d   : > { %p4517_p12 = por %p4516_p10, %p4515_p7 }
  0x1f   : > { %p4518_p0 = pnand %p4517_p12, %p4511_p5 }
  0x21   : > { %4521 = shalt.err (!%p4518_p0)
}
  0x22   : > { %s4522_s16 = scalar_lea.vmem %s4707_s29, 8192  ;;  %s4621_s17 = smov [#allocation2]  }
  0x23   : > { %p4523_p1 = scmp.ne.s32.totalorder %s4707_s29, %s4522_s16  ;;  %s4527_s22 = sshll.u32 %s4621_s17, 4  ;;  %s4528_s22 = int_to_ptr.vmem [resolvable:$false] %s4527_s22 }
  0x24   : > { %s4529_s23 = scalar_lea.vmem %s4528_s22, 16384  ;;  %p4530_p9 = scmp.lt.s32.totalorder %s4707_s29, %s4528_s22 }
  0x25   : > { %p4525_p3 = pnand %p4523_p1, %p4509_p2  ;;  %p4531_p4 = scmp.lt.s32.totalorder %s4529_s23, %s4522_s16 }
  0x27   : > { %p4526_p11 = pneg %p4525_p3  ;;  %p4532_p6 = por %p4531_p4, %p4530_p9 }
  0x29   : > { %p4533_p7 = pnand %p4532_p6, %p4526_p11 }
  0x2b   : > { %4536 = shalt.err (!%p4533_p7)
}
  0x2c   : > { %s4622_s24 = smov 128   ;;  %s4623_s25 = smov 8  }
  0x2d   : > { %4447 = dma.hbm_to_vmem [thread:$0]  (!%p4711_p13), %s4705_s27, 8192, %s4707_s29, %s4716_s2, %s4622_s24, %s4622_s24, %s4623_s25  }
  0x2e   : > { %p123_p0 = scmp.lt.s32.totalorder %s4619_s11, 7  ;;  %p5999_p2 = scmp.ge.s32.totalorder %s4619_s11, 1 }
  0x30   : > { %p124_p5 = pnand %p5999_p2, %p123_p0 }
  0x31   : > { %s4748_s26 = sand.u32 (!%p124_p5), 1, %s4603_s7  }
  0x32   : > { %127 = sbr.rel (%p124_p5) target bundleno = 467 (0x1d3), region = 24  ;;  %s4375_s28 = sshll.u32 (!%p124_p5), %s4748_s26, 9 }
  0x33   : > { %s130_s3 = scalar_lea.sflag (!%p124_p5), [#allocation3], %s4748_s26  ;;  %s4754_s4 = scalar_lea.vmem (!%p124_p5), [#allocation2], %s4375_s28 }
  0x39   : > { %4590 = dma.done.wait (%p4684_p8), %s130_s3, 8192  }
  0x3a   : > { %4592 = vsyncadd (%p4684_p8), %s130_s3, 4294959104  ;;  %vm282_vm0 = vcmask 1041409   ;;  %vm285_vm1 = vcmask 1042434   ;;  %vm288_vm2 = vcmask 1043459   ;;  %vm291_vm3 = vcmask 1044484   ;;  %s5774_s18 = scalar_lea.vmem [#allocation5], %s4375_s28 }
  0x3b   : > { %vm294_vm4 = vcmask 1045509   ;;  %vm297_vm5 = vcmask 1046534   ;;  %v169_v0 = vld [vmem:[%s4754_s4 + $0x80] sm:$0x1]  ;;  %v170_v1 = vld [vmem:[%s4754_s4 + $0x88] sm:$0x1] }
  0x3c   : > { %v171_v2 = vld [vmem:[%s4754_s4 + $0x90] sm:$0x1]  ;;  %v172_v3 = vld [vmem:[%s4754_s4 + $0x98] sm:$0x1]  ;;  %v173_v4 = vld [vmem:[%s4754_s4 + $0xa0] sm:$0x1] }
  0x3d   : > { %v174_v5 = vld [vmem:[%s4754_s4 + $0xa8] sm:$0x1]  ;;  %v175_v6 = vld [vmem:[%s4754_s4 + $0xb0] sm:$0x1]  ;;  %v176_v7 = vld [vmem:[%s4754_s4 + $0xb8] sm:$0x1] }
  0x3e   : > { %v316_v8 = vrot.slane %v170_v1, 7  ;;  %v318_v9 = vrot.slane %v171_v2, 6  ;;  %vm300_vm6 = vcmask 1047559   ;;  %v320_v10 = vrot.slane %v172_v3, 5  ;;  %v153_v13 = vld [vmem:[%s4754_s4] sm:$0x1] }
  0x3f   : > { %v322_v11 = vrot.slane %v173_v4, 4  ;;  %v324_v12 = vrot.slane %v174_v5, 3  ;;  %v326_v15 = vrot.slane %v175_v6, 2  ;;  %v328_v16 = vrot.slane %v176_v7, 1  ;;  %v154_v17 = vld [vmem:[%s4754_s4 + $0x8] sm:$0x1] }
  0x40   : > { %v317_v14 = vsel %vm282_vm0, %v316_v8, %v169_v0  ;;  %v155_v18 = vld [vmem:[%s4754_s4 + $0x10] sm:$0x1]  ;;  %v156_v20 = vld [vmem:[%s4754_s4 + $0x18] sm:$0x1]  ;;  %v157_v21 = vld [vmem:[%s4754_s4 + $0x20] sm:$0x1] }
  0x41   : > { %v319_v19 = vsel %vm285_vm1, %v318_v9, %v317_v14  ;;  %v158_v22 = vld [vmem:[%s4754_s4 + $0x28] sm:$0x1]  ;;  %v159_v24 = vld [vmem:[%s4754_s4 + $0x30] sm:$0x1]  ;;  %v160_v25 = vld [vmem:[%s4754_s4 + $0x38] sm:$0x1] }
  0x42   : > { %v321_v23 = vsel %vm288_vm2, %v320_v10, %v319_v19  ;;  %v281_v26 = vrot.slane %v154_v17, 7  ;;  %v284_v27 = vrot.slane %v155_v18, 6  ;;  %v287_v29 = vrot.slane %v156_v20, 5  ;;  %v177_v32 = vld [vmem:[%s4754_s4 + $0xc0] sm:$0x1]  ;;  %s4439_s27 = sshll.u32 %s4611_s9, 13 }
  0x43   : > { %v323_v28 = vsel %vm291_vm3, %v322_v11, %v321_v23  ;;  %v290_v30 = vrot.slane %v157_v21, 4  ;;  %v293_v31 = vrot.slane %v158_v22, 3  ;;  %v296_v35 = vrot.slane %v159_v24, 2  ;;  %v178_v37 = vld [vmem:[%s4754_s4 + $0xc8] sm:$0x1]  ;;  %s4281_s29 = sshll.u32 %s5774_s18, 4  ;;  %s5939_s5 = scalar_lea.hbm %s5992_s1, %s4439_s27  ;;  %s5941_s29 = int_to_ptr.vmem [resolvable:$true] %s4281_s29 }
  0x44   : > { %v325_v33 = vsel %vm294_vm4, %v324_v12, %v323_v28  ;;  %v283_v34 = vsel %vm282_vm0, %v281_v26, %v153_v13  ;;  %v299_v36 = vrot.slane %v160_v25, 1  ;;  %v179_v38 = vld [vmem:[%s4754_s4 + $0xd0] sm:$0x1]  ;;  %v180_v41 = vld [vmem:[%s4754_s4 + $0xd8] sm:$0x1]  ;;  %v330_v48 = vrot.slane %v178_v37, 7 }
  0x45   : > { %v327_v39 = vsel %vm297_vm5, %v326_v15, %v325_v33  ;;  %v286_v40 = vsel %vm285_vm1, %v284_v27, %v283_v34  ;;  %v181_v42 = vld [vmem:[%s4754_s4 + $0xe0] sm:$0x1]  ;;  %v182_v43 = vld [vmem:[%s4754_s4 + $0xe8] sm:$0x1]  ;;  %v183_v46 = vld [vmem:[%s4754_s4 + $0xf0] sm:$0x1] }
  0x46   : > { %v329_v44 = vsel %vm300_vm6, %v328_v16, %v327_v39  ;;  %v289_v45 = vsel %vm288_vm2, %v287_v29, %v286_v40  ;;  %v184_v47 = vld [vmem:[%s4754_s4 + $0xf8] sm:$0x1]  ;;  %v332_v49 = vrot.slane %v179_v38, 6  ;;  %v334_v51 = vrot.slane %v180_v41, 5  ;;  %v161_v54 = vld [vmem:[%s4754_s4 + $0x40] sm:$0x1] }
  0x47   : > { %472 = vxpose.xlu1.b32.start.end [1/1] (short) (narrow) %v329_v44, 8  ;;  %v292_v50 = vsel %vm291_vm3, %v290_v30, %v289_v45  ;;  %v336_v52 = vrot.slane %v181_v42, 4  ;;  %v338_v53 = vrot.slane %v182_v43, 3  ;;  %v331_v56 = vsel %vm282_vm0, %v330_v48, %v177_v32  ;;  %v162_v59 = vld [vmem:[%s4754_s4 + $0x48] sm:$0x1]  ;;  %s4265_s12 = scalar_lea.sflag [#allocation4], %s4748_s26 }
  0x48   : > { %v295_v55 = vsel %vm294_vm4, %v293_v31, %v292_v50  ;;  %v340_v57 = vrot.slane %v183_v46, 2  ;;  %v342_v58 = vrot.slane %v184_v47, 1  ;;  %v163_v60 = vld [vmem:[%s4754_s4 + $0x50] sm:$0x1]  ;;  %v333_v62 = vsel %vm285_vm1, %v332_v49, %v331_v56  ;;  %v164_v63 = vld [vmem:[%s4754_s4 + $0x58] sm:$0x1] }
  0x49   : > { %v298_v61 = vsel %vm297_vm5, %v296_v35, %v295_v55  ;;  %v165_v0 = vld [vmem:[%s4754_s4 + $0x60] sm:$0x1]  ;;  %v166_v1 = vld [vmem:[%s4754_s4 + $0x68] sm:$0x1]  ;;  %v335_v3 = vsel %vm288_vm2, %v334_v51, %v333_v62  ;;  %v167_v4 = vld [vmem:[%s4754_s4 + $0x70] sm:$0x1] }
  0x4a   : > { %v301_v2 = vsel %vm300_vm6, %v299_v36, %v298_v61  ;;  %v168_v5 = vld [vmem:[%s4754_s4 + $0x78] sm:$0x1]  ;;  %v302_v6 = vrot.slane %v162_v59, 7  ;;  %v304_v7 = vrot.slane %v163_v60, 6  ;;  %v337_v8 = vsel %vm291_vm3, %v336_v52, %v335_v3  ;;  %v193_v12 = vld [vmem:[%s4754_s4 + $0x140] sm:$0x1] }
  0x4b   : > { %408 = vxpose.xlu0.b32.start.end [1/1] (short) (narrow) %v301_v2, 8  ;;  %v306_v9 = vrot.slane %v164_v63, 5  ;;  %v308_v10 = vrot.slane %v165_v0, 4  ;;  %v310_v11 = vrot.slane %v166_v1, 3  ;;  %v339_v13 = vsel %vm294_vm4, %v338_v53, %v337_v8  ;;  %v194_v17 = vld [vmem:[%s4754_s4 + $0x148] sm:$0x1] }
  0x4c   : > { %v303_v14 = vsel %vm282_vm0, %v302_v6, %v161_v54  ;;  %v312_v15 = vrot.slane %v167_v4, 2  ;;  %v314_v16 = vrot.slane %v168_v5, 1  ;;  %v195_v18 = vld [vmem:[%s4754_s4 + $0x150] sm:$0x1]  ;;  %v341_v19 = vsel %vm297_vm5, %v340_v57, %v339_v13  ;;  %v196_v21 = vld [vmem:[%s4754_s4 + $0x158] sm:$0x1] }
  0x4d   : > { %v305_v20 = vsel %vm285_vm1, %v304_v7, %v303_v14  ;;  %v197_v22 = vld [vmem:[%s4754_s4 + $0x160] sm:$0x1]  ;;  %v198_v23 = vld [vmem:[%s4754_s4 + $0x168] sm:$0x1]  ;;  %v343_v24 = vsel %vm300_vm6, %v342_v58, %v341_v19  ;;  %v199_v26 = vld [vmem:[%s4754_s4 + $0x170] sm:$0x1] }
  0x4e   : > { %v307_v25 = vsel %vm288_vm2, %v306_v9, %v305_v20  ;;  %v200_v27 = vld [vmem:[%s4754_s4 + $0x178] sm:$0x1]  ;;  %v358_v28 = vrot.slane %v194_v17, 7  ;;  %v360_v29 = vrot.slane %v195_v18, 6  ;;  %504 = vxpose.xlu1.b32.start.end [1/1] (short) (narrow) %v343_v24, 8  ;;  %v362_v31 = vrot.slane %v196_v21, 5 }
  0x4f   : > { %v309_v30 = vsel %vm291_vm3, %v308_v10, %v307_v25  ;;  %v364_v32 = vrot.slane %v197_v22, 4  ;;  %v366_v33 = vrot.slane %v198_v23, 3  ;;  %v185_v34 = vld [vmem:[%s4754_s4 + $0x100] sm:$0x1]  ;;  %v368_v37 = vrot.slane %v199_v26, 2  ;;  %s4537_s13 = scalar_lea.vmem %s5941_s29, 8192 }
  0x50   : > { %v311_v35 = vsel %vm294_vm4, %v310_v11, %v309_v30  ;;  %v359_v36 = vsel %vm282_vm0, %v358_v28, %v193_v12  ;;  %v370_v38 = vrot.slane %v200_v27, 1  ;;  %v186_v39 = vld [vmem:[%s4754_s4 + $0x108] sm:$0x1]  ;;  %v187_v40 = vld [vmem:[%s4754_s4 + $0x110] sm:$0x1]  ;;  %vm664_vm7 = vcmask 64512   ;;  %p4538_p8 = scmp.ne.s32.totalorder %s5941_s29, %s4537_s13 }
  0x51   : > { %v313_v41 = vsel %vm297_vm5, %v312_v15, %v311_v35  ;;  %v361_v42 = vsel %vm285_vm1, %v360_v29, %v359_v36  ;;  %v188_v43 = vld [vmem:[%s4754_s4 + $0x118] sm:$0x1]  ;;  %v189_v44 = vld [vmem:[%s4754_s4 + $0x120] sm:$0x1]  ;;  %v190_v45 = vld [vmem:[%s4754_s4 + $0x128] sm:$0x1] }
  0x52   : > { %v315_v46 = vsel %vm300_vm6, %v314_v16, %v313_v41  ;;  %v363_v47 = vsel %vm288_vm2, %v362_v31, %v361_v42  ;;  %v191_v48 = vld [vmem:[%s4754_s4 + $0x130] sm:$0x1]  ;;  %v192_v49 = vld [vmem:[%s4754_s4 + $0x138] sm:$0x1]  ;;  %v344_v50 = vrot.slane %v186_v39, 7  ;;  %v346_v51 = vrot.slane %v187_v40, 6 }
  0x53   : > { %440 = vxpose.xlu0.b32.start.end [1/1] (short) (narrow) %v315_v46, 8  ;;  %v365_v52 = vsel %vm291_vm3, %v364_v32, %v363_v47  ;;  %v348_v53 = vrot.slane %v188_v43, 5  ;;  %v350_v54 = vrot.slane %v189_v44, 4  ;;  %v352_v55 = vrot.slane %v190_v45, 3  ;;  %v209_v56 = vld [vmem:[%s4754_s4 + $0x1c0] sm:$0x1] }
  0x54   : > { %v367_v57 = vsel %vm294_vm4, %v366_v33, %v365_v52  ;;  %v345_v58 = vsel %vm282_vm0, %v344_v50, %v185_v34  ;;  %v354_v59 = vrot.slane %v191_v48, 2  ;;  %v356_v60 = vrot.slane %v192_v49, 1  ;;  %v210_v61 = vld [vmem:[%s4754_s4 + $0x1c8] sm:$0x1]  ;;  %v211_v62 = vld [vmem:[%s4754_s4 + $0x1d0] sm:$0x1] }
  0x55   : > { %v369_v63 = vsel %vm297_vm5, %v368_v37, %v367_v57  ;;  %v347_v0 = vsel %vm285_vm1, %v346_v51, %v345_v58  ;;  %v212_v1 = vld [vmem:[%s4754_s4 + $0x1d8] sm:$0x1]  ;;  %v213_v2 = vld [vmem:[%s4754_s4 + $0x1e0] sm:$0x1]  ;;  %v214_v3 = vld [vmem:[%s4754_s4 + $0x1e8] sm:$0x1] }
  0x56   : > { %v371_v4 = vsel %vm300_vm6, %v370_v38, %v369_v63  ;;  %v349_v5 = vsel %vm288_vm2, %v348_v53, %v347_v0  ;;  %v215_v6 = vld [vmem:[%s4754_s4 + $0x1f0] sm:$0x1]  ;;  %v216_v7 = vld [vmem:[%s4754_s4 + $0x1f8] sm:$0x1]  ;;  %v386_v8 = vrot.slane %v210_v61, 7  ;;  %v388_v9 = vrot.slane %v211_v62, 6 }
  0x57   : > { %568 = vxpose.xlu1.b32.start.end [1/1] (short) (narrow) %v371_v4, 8  ;;  %v351_v10 = vsel %vm291_vm3, %v350_v54, %v349_v5  ;;  %v390_v11 = vrot.slane %v212_v1, 5  ;;  %v392_v12 = vrot.slane %v213_v2, 4  ;;  %v394_v13 = vrot.slane %v214_v3, 3  ;;  %v201_v14 = vld [vmem:[%s4754_s4 + $0x180] sm:$0x1] }
  0x58   : > { %v353_v15 = vsel %vm294_vm4, %v352_v55, %v351_v10  ;;  %v387_v16 = vsel %vm282_vm0, %v386_v8, %v209_v56  ;;  %v396_v17 = vrot.slane %v215_v6, 2  ;;  %v398_v18 = vrot.slane %v216_v7, 1  ;;  %v202_v19 = vld [vmem:[%s4754_s4 + $0x188] sm:$0x1]  ;;  %v203_v20 = vld [vmem:[%s4754_s4 + $0x190] sm:$0x1] }
  0x59   : > { %v355_v21 = vsel %vm297_vm5, %v354_v59, %v353_v15  ;;  %v389_v22 = vsel %vm285_vm1, %v388_v9, %v387_v16  ;;  %v204_v23 = vld [vmem:[%s4754_s4 + $0x198] sm:$0x1]  ;;  %v205_v24 = vld [vmem:[%s4754_s4 + $0x1a0] sm:$0x1]  ;;  %v206_v25 = vld [vmem:[%s4754_s4 + $0x1a8] sm:$0x1] }
  0x5a   : > { %v357_v26 = vsel %vm300_vm6, %v356_v60, %v355_v21  ;;  %v391_v27 = vsel %vm288_vm2, %v390_v11, %v389_v22  ;;  %v207_v28 = vld [vmem:[%s4754_s4 + $0x1b0] sm:$0x1]  ;;  %v208_v29 = vld [vmem:[%s4754_s4 + $0x1b8] sm:$0x1]  ;;  %v372_v30 = vrot.slane %v202_v19, 7  ;;  %v374_v31 = vrot.slane %v203_v20, 6 }
  0x5b   : > { %536 = vxpose.xlu0.b32.start.end [1/1] (short) (narrow) %v357_v26, 8  ;;  %v393_v32 = vsel %vm291_vm3, %v392_v12, %v391_v27  ;;  %v376_v33 = vrot.slane %v204_v23, 5  ;;  %v378_v34 = vrot.slane %v205_v24, 4  ;;  %v380_v35 = vrot.slane %v206_v25, 3  ;;  %v681_v36 = vld [vmem:[%s4754_s4 + $0x41] sm:$0x1] }
  0x5c   : > { %v395_v37 = vsel %vm294_vm4, %v394_v13, %v393_v32  ;;  %v373_v38 = vsel %vm282_vm0, %v372_v30, %v201_v14  ;;  %v382_v39 = vrot.slane %v207_v28, 2  ;;  %v384_v40 = vrot.slane %v208_v29, 1  ;;  %v682_v41 = vld [vmem:[%s4754_s4 + $0x49] sm:$0x1]  ;;  %v683_v42 = vld [vmem:[%s4754_s4 + $0x51] sm:$0x1] }
  0x5d   : > { %v397_v43 = vsel %vm297_vm5, %v396_v17, %v395_v37  ;;  %v375_v44 = vsel %vm285_vm1, %v374_v31, %v373_v38  ;;  %v684_v45 = vld [vmem:[%s4754_s4 + $0x59] sm:$0x1]  ;;  %v685_v46 = vld [vmem:[%s4754_s4 + $0x61] sm:$0x1]  ;;  %v686_v47 = vld [vmem:[%s4754_s4 + $0x69] sm:$0x1] }
  0x5e   : > { %v399_v48 = vsel %vm300_vm6, %v398_v18, %v397_v43  ;;  %v377_v49 = vsel %vm288_vm2, %v376_v33, %v375_v44  ;;  %v687_v50 = vld [vmem:[%s4754_s4 + $0x71] sm:$0x1]  ;;  %v688_v51 = vld [vmem:[%s4754_s4 + $0x79] sm:$0x1]  ;;  %v815_v52 = vrot.slane %v682_v41, 7  ;;  %v817_v53 = vrot.slane %v683_v42, 6 }
  0x5f   : > { %632 = vxpose.xlu1.b32.start.end [1/1] (short) (narrow) %v399_v48, 8  ;;  %v379_v54 = vsel %vm291_vm3, %v378_v34, %v377_v49  ;;  %v819_v55 = vrot.slane %v684_v45, 5  ;;  %v821_v56 = vrot.slane %v685_v46, 4  ;;  %v823_v57 = vrot.slane %v686_v47, 3  ;;  %v673_v58 = vld [vmem:[%s4754_s4 + $0x1] sm:$0x1] }
  0x60   : > { %v381_v59 = vsel %vm294_vm4, %v380_v35, %v379_v54  ;;  %v816_v60 = vsel %vm282_vm0, %v815_v52, %v681_v36  ;;  %v825_v61 = vrot.slane %v687_v50, 2  ;;  %v827_v62 = vrot.slane %v688_v51, 1  ;;  %v674_v63 = vld [vmem:[%s4754_s4 + $0x9] sm:$0x1]  ;;  %v675_v0 = vld [vmem:[%s4754_s4 + $0x11] sm:$0x1] }
  0x61   : > { %v383_v1 = vsel %vm297_vm5, %v382_v39, %v381_v59  ;;  %v818_v2 = vsel %vm285_vm1, %v817_v53, %v816_v60  ;;  %v676_v3 = vld [vmem:[%s4754_s4 + $0x19] sm:$0x1]  ;;  %v677_v4 = vld [vmem:[%s4754_s4 + $0x21] sm:$0x1]  ;;  %v678_v5 = vld [vmem:[%s4754_s4 + $0x29] sm:$0x1] }
  0x62   : > { %v385_v6 = vsel %vm300_vm6, %v384_v40, %v383_v1  ;;  %v820_v7 = vsel %vm288_vm2, %v819_v55, %v818_v2  ;;  %v679_v8 = vld [vmem:[%s4754_s4 + $0x31] sm:$0x1]  ;;  %v680_v9 = vld [vmem:[%s4754_s4 + $0x39] sm:$0x1]  ;;  %v801_v10 = vrot.slane %v674_v63, 7  ;;  %v803_v11 = vrot.slane %v675_v0, 6 }
  0x63   : > { %600 = vxpose.xlu0.b32.start.end [1/1] (short) (narrow) %v385_v6, 8  ;;  %v822_v12 = vsel %vm291_vm3, %v821_v56, %v820_v7  ;;  %v805_v13 = vrot.slane %v676_v3, 5  ;;  %v807_v14 = vrot.slane %v677_v4, 4  ;;  %v809_v15 = vrot.slane %v678_v5, 3  ;;  %v697_v16 = vld [vmem:[%s4754_s4 + $0xc1] sm:$0x1] }
  0x64   : > { %v824_v17 = vsel %vm294_vm4, %v823_v57, %v822_v12  ;;  %v802_v18 = vsel %vm282_vm0, %v801_v10, %v673_v58  ;;  %v811_v19 = vrot.slane %v679_v8, 2  ;;  %v813_v20 = vrot.slane %v680_v9, 1  ;;  %v698_v21 = vld [vmem:[%s4754_s4 + $0xc9] sm:$0x1]  ;;  %v699_v22 = vld [vmem:[%s4754_s4 + $0xd1] sm:$0x1] }
  0x65   : > { %v826_v23 = vsel %vm297_vm5, %v825_v61, %v824_v17  ;;  %v804_v24 = vsel %vm285_vm1, %v803_v11, %v802_v18  ;;  %v700_v25 = vld [vmem:[%s4754_s4 + $0xd9] sm:$0x1]  ;;  %v701_v26 = vld [vmem:[%s4754_s4 + $0xe1] sm:$0x1]  ;;  %v702_v27 = vld [vmem:[%s4754_s4 + $0xe9] sm:$0x1] }
  0x66   : > { %v828_v28 = vsel %vm300_vm6, %v827_v62, %v826_v23  ;;  %v806_v29 = vsel %vm288_vm2, %v805_v13, %v804_v24  ;;  %v703_v30 = vld [vmem:[%s4754_s4 + $0xf1] sm:$0x1]  ;;  %v704_v31 = vld [vmem:[%s4754_s4 + $0xf9] sm:$0x1]  ;;  %v843_v32 = vrot.slane %v698_v21, 7  ;;  %v845_v33 = vrot.slane %v699_v22, 6 }
  0x67   : > { %953 = vxpose.xlu1.b32.start.end [1/1] (short) (narrow) %v828_v28, 8  ;;  %v808_v34 = vsel %vm291_vm3, %v807_v14, %v806_v29  ;;  %v847_v35 = vrot.slane %v700_v25, 5  ;;  %v849_v36 = vrot.slane %v701_v26, 4  ;;  %v851_v37 = vrot.slane %v702_v27, 3  ;;  %v689_v38 = vld [vmem:[%s4754_s4 + $0x81] sm:$0x1] }
  0x68   : > { %v810_v39 = vsel %vm294_vm4, %v809_v15, %v808_v34  ;;  %v844_v40 = vsel %vm282_vm0, %v843_v32, %v697_v16  ;;  %v853_v41 = vrot.slane %v703_v30, 2  ;;  %v855_v42 = vrot.slane %v704_v31, 1  ;;  %v690_v43 = vld [vmem:[%s4754_s4 + $0x89] sm:$0x1]  ;;  %v691_v44 = vld [vmem:[%s4754_s4 + $0x91] sm:$0x1] }
  0x69   : > { %v812_v45 = vsel %vm297_vm5, %v811_v19, %v810_v39  ;;  %v846_v46 = vsel %vm285_vm1, %v845_v33, %v844_v40  ;;  %v692_v47 = vld [vmem:[%s4754_s4 + $0x99] sm:$0x1]  ;;  %v693_v48 = vld [vmem:[%s4754_s4 + $0xa1] sm:$0x1]  ;;  %v694_v49 = vld [vmem:[%s4754_s4 + $0xa9] sm:$0x1] }
  0x6a   : > { %v814_v50 = vsel %vm300_vm6, %v813_v20, %v812_v45  ;;  %v848_v51 = vsel %vm288_vm2, %v847_v35, %v846_v46  ;;  %v695_v52 = vld [vmem:[%s4754_s4 + $0xb1] sm:$0x1]  ;;  %v696_v53 = vld [vmem:[%s4754_s4 + $0xb9] sm:$0x1]  ;;  %v829_v54 = vrot.slane %v690_v43, 7  ;;  %v831_v55 = vrot.slane %v691_v44, 6 }
  0x6b   : > { %921 = vxpose.xlu0.b32.start.end [1/1] (short) (narrow) %v814_v50, 8  ;;  %v850_v56 = vsel %vm291_vm3, %v849_v36, %v848_v51  ;;  %v833_v57 = vrot.slane %v692_v47, 5  ;;  %v835_v58 = vrot.slane %v693_v48, 4  ;;  %v837_v59 = vrot.slane %v694_v49, 3  ;;  %v713_v60 = vld [vmem:[%s4754_s4 + $0x141] sm:$0x1] }
  0x6c   : > { %v852_v61 = vsel %vm294_vm4, %v851_v37, %v850_v56  ;;  %v830_v62 = vsel %vm282_vm0, %v829_v54, %v689_v38  ;;  %v839_v63 = vrot.slane %v695_v52, 2  ;;  %v841_v0 = vrot.slane %v696_v53, 1  ;;  %v714_v1 = vld [vmem:[%s4754_s4 + $0x149] sm:$0x1]  ;;  %v715_v2 = vld [vmem:[%s4754_s4 + $0x151] sm:$0x1] }
  0x6d   : > { %v854_v3 = vsel %vm297_vm5, %v853_v41, %v852_v61  ;;  %v832_v4 = vsel %vm285_vm1, %v831_v55, %v830_v62  ;;  %v716_v5 = vld [vmem:[%s4754_s4 + $0x159] sm:$0x1]  ;;  %v717_v6 = vld [vmem:[%s4754_s4 + $0x161] sm:$0x1]  ;;  %v718_v7 = vld [vmem:[%s4754_s4 + $0x169] sm:$0x1] }
  0x6e   : > { %v856_v8 = vsel %vm300_vm6, %v855_v42, %v854_v3  ;;  %v834_v9 = vsel %vm288_vm2, %v833_v57, %v832_v4  ;;  %v719_v10 = vld [vmem:[%s4754_s4 + $0x171] sm:$0x1]  ;;  %v720_v11 = vld [vmem:[%s4754_s4 + $0x179] sm:$0x1]  ;;  %v871_v12 = vrot.slane %v714_v1, 7  ;;  %v873_v13 = vrot.slane %v715_v2, 6 }
  0x6f   : > { %1017 = vxpose.xlu1.b32.start.end [1/1] (short) (narrow) %v856_v8, 8  ;;  %v836_v14 = vsel %vm291_vm3, %v835_v58, %v834_v9  ;;  %v875_v15 = vrot.slane %v716_v5, 5  ;;  %v877_v16 = vrot.slane %v717_v6, 4  ;;  %v879_v17 = vrot.slane %v718_v7, 3  ;;  %v705_v18 = vld [vmem:[%s4754_s4 + $0x101] sm:$0x1] }
  0x70   : > { %v838_v19 = vsel %vm294_vm4, %v837_v59, %v836_v14  ;;  %v872_v20 = vsel %vm282_vm0, %v871_v12, %v713_v60  ;;  %v881_v21 = vrot.slane %v719_v10, 2  ;;  %v883_v22 = vrot.slane %v720_v11, 1  ;;  %v706_v23 = vld [vmem:[%s4754_s4 + $0x109] sm:$0x1]  ;;  %v707_v24 = vld [vmem:[%s4754_s4 + $0x111] sm:$0x1] }
  0x71   : > { %v840_v25 = vsel %vm297_vm5, %v839_v63, %v838_v19  ;;  %v874_v26 = vsel %vm285_vm1, %v873_v13, %v872_v20  ;;  %v708_v27 = vld [vmem:[%s4754_s4 + $0x119] sm:$0x1]  ;;  %v709_v28 = vld [vmem:[%s4754_s4 + $0x121] sm:$0x1]  ;;  %v710_v29 = vld [vmem:[%s4754_s4 + $0x129] sm:$0x1] }
  0x72   : > { %v842_v30 = vsel %vm300_vm6, %v841_v0, %v840_v25  ;;  %v876_v31 = vsel %vm288_vm2, %v875_v15, %v874_v26  ;;  %v711_v32 = vld [vmem:[%s4754_s4 + $0x131] sm:$0x1]  ;;  %v712_v33 = vld [vmem:[%s4754_s4 + $0x139] sm:$0x1]  ;;  %v857_v34 = vrot.slane %v706_v23, 7  ;;  %v859_v35 = vrot.slane %v707_v24, 6 }
  0x73   : > { %985 = vxpose.xlu0.b32.start.end [1/1] (short) (narrow) %v842_v30, 8  ;;  %v878_v36 = vsel %vm291_vm3, %v877_v16, %v876_v31  ;;  %v861_v37 = vrot.slane %v708_v27, 5  ;;  %v863_v38 = vrot.slane %v709_v28, 4  ;;  %v865_v39 = vrot.slane %v710_v29, 3  ;;  %v729_v40 = vld [vmem:[%s4754_s4 + $0x1c1] sm:$0x1] }
  0x74   : > { %v880_v41 = vsel %vm294_vm4, %v879_v17, %v878_v36  ;;  %v858_v42 = vsel %vm282_vm0, %v857_v34, %v705_v18  ;;  %v867_v43 = vrot.slane %v711_v32, 2  ;;  %v869_v44 = vrot.slane %v712_v33, 1  ;;  %v730_v45 = vld [vmem:[%s4754_s4 + $0x1c9] sm:$0x1]  ;;  %v731_v46 = vld [vmem:[%s4754_s4 + $0x1d1] sm:$0x1] }
  0x75   : > { %v882_v47 = vsel %vm297_vm5, %v881_v21, %v880_v41  ;;  %v860_v48 = vsel %vm285_vm1, %v859_v35, %v858_v42  ;;  %v732_v49 = vld [vmem:[%s4754_s4 + $0x1d9] sm:$0x1]  ;;  %v733_v50 = vld [vmem:[%s4754_s4 + $0x1e1] sm:$0x1]  ;;  %v734_v51 = vld [vmem:[%s4754_s4 + $0x1e9] sm:$0x1] }
  0x76   : > { %v884_v52 = vsel %vm300_vm6, %v883_v22, %v882_v47  ;;  %v862_v53 = vsel %vm288_vm2, %v861_v37, %v860_v48  ;;  %v735_v54 = vld [vmem:[%s4754_s4 + $0x1f1] sm:$0x1]  ;;  %v736_v55 = vld [vmem:[%s4754_s4 + $0x1f9] sm:$0x1]  ;;  %v899_v56 = vrot.slane %v730_v45, 7  ;;  %v901_v57 = vrot.slane %v731_v46, 6 }
  0x77   : > { %1081 = vxpose.xlu1.b32.start.end [1/1] (short) (narrow) %v884_v52, 8  ;;  %v864_v58 = vsel %vm291_vm3, %v863_v38, %v862_v53  ;;  %v903_v59 = vrot.slane %v732_v49, 5  ;;  %v905_v60 = vrot.slane %v733_v50, 4  ;;  %v907_v61 = vrot.slane %v734_v51, 3  ;;  %v721_v62 = vld [vmem:[%s4754_s4 + $0x181] sm:$0x1] }
  0x78   : > { %v866_v63 = vsel %vm294_vm4, %v865_v39, %v864_v58  ;;  %v900_v0 = vsel %vm282_vm0, %v899_v56, %v729_v40  ;;  %v909_v1 = vrot.slane %v735_v54, 2  ;;  %v911_v2 = vrot.slane %v736_v55, 1  ;;  %v722_v3 = vld [vmem:[%s4754_s4 + $0x189] sm:$0x1]  ;;  %v723_v4 = vld [vmem:[%s4754_s4 + $0x191] sm:$0x1] }
  0x79   : > { %v868_v5 = vsel %vm297_vm5, %v867_v43, %v866_v63  ;;  %v902_v6 = vsel %vm285_vm1, %v901_v57, %v900_v0  ;;  %v724_v7 = vld [vmem:[%s4754_s4 + $0x199] sm:$0x1]  ;;  %v725_v8 = vld [vmem:[%s4754_s4 + $0x1a1] sm:$0x1]  ;;  %v726_v9 = vld [vmem:[%s4754_s4 + $0x1a9] sm:$0x1] }
  0x7a   : > { %v870_v10 = vsel %vm300_vm6, %v869_v44, %v868_v5  ;;  %v904_v11 = vsel %vm288_vm2, %v903_v59, %v902_v6  ;;  %v727_v12 = vld [vmem:[%s4754_s4 + $0x1b1] sm:$0x1]  ;;  %v728_v13 = vld [vmem:[%s4754_s4 + $0x1b9] sm:$0x1]  ;;  %v885_v14 = vrot.slane %v722_v3, 7  ;;  %v887_v15 = vrot.slane %v723_v4, 6 }
  0x7b   : > { %1049 = vxpose.xlu0.b32.start.end [1/1] (short) (narrow) %v870_v10, 8  ;;  %v906_v16 = vsel %vm291_vm3, %v905_v60, %v904_v11  ;;  %v889_v17 = vrot.slane %v724_v7, 5  ;;  %v891_v18 = vrot.slane %v725_v8, 4  ;;  %v893_v19 = vrot.slane %v726_v9, 3  ;;  %v1194_v20 = vld [vmem:[%s4754_s4 + $0x42] sm:$0x1] }
  0x7c   : > { %v908_v21 = vsel %vm294_vm4, %v907_v61, %v906_v16  ;;  %v886_v22 = vsel %vm282_vm0, %v885_v14, %v721_v62  ;;  %v895_v23 = vrot.slane %v727_v12, 2  ;;  %v897_v24 = vrot.slane %v728_v13, 1  ;;  %v1195_v25 = vld [vmem:[%s4754_s4 + $0x4a] sm:$0x1]  ;;  %v1196_v26 = vld [vmem:[%s4754_s4 + $0x52] sm:$0x1] }
  0x7d   : > { %v910_v27 = vsel %vm297_vm5, %v909_v1, %v908_v21  ;;  %v888_v28 = vsel %vm285_vm1, %v887_v15, %v886_v22  ;;  %v1197_v29 = vld [vmem:[%s4754_s4 + $0x5a] sm:$0x1]  ;;  %v1198_v30 = vld [vmem:[%s4754_s4 + $0x62] sm:$0x1]  ;;  %v1199_v31 = vld [vmem:[%s4754_s4 + $0x6a] sm:$0x1] }
  0x7e   : > { %v912_v32 = vsel %vm300_vm6, %v911_v2, %v910_v27  ;;  %v890_v33 = vsel %vm288_vm2, %v889_v17, %v888_v28  ;;  %v1200_v34 = vld [vmem:[%s4754_s4 + $0x72] sm:$0x1]  ;;  %v1201_v35 = vld [vmem:[%s4754_s4 + $0x7a] sm:$0x1]  ;;  %v1328_v36 = vrot.slane %v1195_v25, 7  ;;  %v1330_v37 = vrot.slane %v1196_v26, 6 }
  0x7f   : > { %1145 = vxpose.xlu1.b32.start.end [1/1] (short) (narrow) %v912_v32, 8  ;;  %v892_v38 = vsel %vm291_vm3, %v891_v18, %v890_v33  ;;  %v1332_v39 = vrot.slane %v1197_v29, 5  ;;  %v1334_v40 = vrot.slane %v1198_v30, 4  ;;  %v1336_v41 = vrot.slane %v1199_v31, 3  ;;  %v1186_v42 = vld [vmem:[%s4754_s4 + $0x2] sm:$0x1] }
  0x80   : > { %v894_v43 = vsel %vm294_vm4, %v893_v19, %v892_v38  ;;  %v1329_v44 = vsel %vm282_vm0, %v1328_v36, %v1194_v20  ;;  %v1338_v45 = vrot.slane %v1200_v34, 2  ;;  %v1340_v46 = vrot.slane %v1201_v35, 1  ;;  %v1187_v47 = vld [vmem:[%s4754_s4 + $0xa] sm:$0x1]  ;;  %v1188_v48 = vld [vmem:[%s4754_s4 + $0x12] sm:$0x1] }
  0x81   : > { %v896_v49 = vsel %vm297_vm5, %v895_v23, %v894_v43  ;;  %v1331_v50 = vsel %vm285_vm1, %v1330_v37, %v1329_v44  ;;  %v1189_v51 = vld [vmem:[%s4754_s4 + $0x1a] sm:$0x1]  ;;  %v1190_v52 = vld [vmem:[%s4754_s4 + $0x22] sm:$0x1]  ;;  %v1191_v53 = vld [vmem:[%s4754_s4 + $0x2a] sm:$0x1] }
  0x82   : > { %v898_v54 = vsel %vm300_vm6, %v897_v24, %v896_v49  ;;  %v1333_v55 = vsel %vm288_vm2, %v1332_v39, %v1331_v50  ;;  %v1192_v56 = vld [vmem:[%s4754_s4 + $0x32] sm:$0x1]  ;;  %v1193_v57 = vld [vmem:[%s4754_s4 + $0x3a] sm:$0x1]  ;;  %v1314_v58 = vrot.slane %v1187_v47, 7  ;;  %v1316_v59 = vrot.slane %v1188_v48, 6 }
  0x83   : > { %1113 = vxpose.xlu0.b32.start.end [1/1] (short) (narrow) %v898_v54, 8  ;;  %v1335_v60 = vsel %vm291_vm3, %v1334_v40, %v1333_v55  ;;  %v1318_v61 = vrot.slane %v1189_v51, 5  ;;  %v1320_v62 = vrot.slane %v1190_v52, 4  ;;  %v1322_v63 = vrot.slane %v1191_v53, 3  ;;  %v1210_v0 = vld [vmem:[%s4754_s4 + $0xc2] sm:$0x1] }
  0x84   : > { %v1337_v1 = vsel %vm294_vm4, %v1336_v41, %v1335_v60  ;;  %v1315_v2 = vsel %vm282_vm0, %v1314_v58, %v1186_v42  ;;  %v1324_v3 = vrot.slane %v1192_v56, 2  ;;  %v1326_v4 = vrot.slane %v1193_v57, 1  ;;  %v1211_v5 = vld [vmem:[%s4754_s4 + $0xca] sm:$0x1]  ;;  %v1212_v6 = vld [vmem:[%s4754_s4 + $0xd2] sm:$0x1] }
  0x85   : > { %v1339_v7 = vsel %vm297_vm5, %v1338_v45, %v1337_v1  ;;  %v1317_v8 = vsel %vm285_vm1, %v1316_v59, %v1315_v2  ;;  %v1213_v9 = vld [vmem:[%s4754_s4 + $0xda] sm:$0x1]  ;;  %v1214_v10 = vld [vmem:[%s4754_s4 + $0xe2] sm:$0x1]  ;;  %v1215_v11 = vld [vmem:[%s4754_s4 + $0xea] sm:$0x1] }
  0x86   : > { %v1341_v12 = vsel %vm300_vm6, %v1340_v46, %v1339_v7  ;;  %v1319_v13 = vsel %vm288_vm2, %v1318_v61, %v1317_v8  ;;  %v1216_v14 = vld [vmem:[%s4754_s4 + $0xf2] sm:$0x1]  ;;  %v1217_v15 = vld [vmem:[%s4754_s4 + $0xfa] sm:$0x1]  ;;  %v1356_v16 = vrot.slane %v1211_v5, 7  ;;  %v1358_v17 = vrot.slane %v1212_v6, 6 }
  0x87   : > { %1466 = vxpose.xlu1.b32.start.end [1/1] (short) (narrow) %v1341_v12, 8  ;;  %v1321_v18 = vsel %vm291_vm3, %v1320_v62, %v1319_v13  ;;  %v1360_v19 = vrot.slane %v1213_v9, 5  ;;  %v1362_v20 = vrot.slane %v1214_v10, 4  ;;  %v1364_v21 = vrot.slane %v1215_v11, 3  ;;  %v1202_v22 = vld [vmem:[%s4754_s4 + $0x82] sm:$0x1] }
  0x88   : > { %v1323_v23 = vsel %vm294_vm4, %v1322_v63, %v1321_v18  ;;  %v1357_v24 = vsel %vm282_vm0, %v1356_v16, %v1210_v0  ;;  %v1366_v25 = vrot.slane %v1216_v14, 2  ;;  %v1368_v26 = vrot.slane %v1217_v15, 1  ;;  %v1203_v27 = vld [vmem:[%s4754_s4 + $0x8a] sm:$0x1]  ;;  %v1204_v28 = vld [vmem:[%s4754_s4 + $0x92] sm:$0x1] }
  0x89   : > { %v1325_v29 = vsel %vm297_vm5, %v1324_v3, %v1323_v23  ;;  %v1359_v30 = vsel %vm285_vm1, %v1358_v17, %v1357_v24  ;;  %v1205_v31 = vld [vmem:[%s4754_s4 + $0x9a] sm:$0x1]  ;;  %v1206_v32 = vld [vmem:[%s4754_s4 + $0xa2] sm:$0x1]  ;;  %v1207_v33 = vld [vmem:[%s4754_s4 + $0xaa] sm:$0x1] }
  0x8a   : > { %v1327_v34 = vsel %vm300_vm6, %v1326_v4, %v1325_v29  ;;  %v1361_v35 = vsel %vm288_vm2, %v1360_v19, %v1359_v30  ;;  %v1208_v36 = vld [vmem:[%s4754_s4 + $0xb2] sm:$0x1]  ;;  %v1209_v37 = vld [vmem:[%s4754_s4 + $0xba] sm:$0x1]  ;;  %v1342_v38 = vrot.slane %v1203_v27, 7  ;;  %v1344_v39 = vrot.slane %v1204_v28, 6 }
  0x8b   : > { %1434 = vxpose.xlu0.b32.start.end [1/1] (short) (narrow) %v1327_v34, 8  ;;  %v1363_v40 = vsel %vm291_vm3, %v1362_v20, %v1361_v35  ;;  %v1346_v41 = vrot.slane %v1205_v31, 5  ;;  %v1348_v42 = vrot.slane %v1206_v32, 4  ;;  %v1350_v43 = vrot.slane %v1207_v33, 3  ;;  %v1226_v44 = vld [vmem:[%s4754_s4 + $0x142] sm:$0x1] }
  0x8c   : > { %v1365_v45 = vsel %vm294_vm4, %v1364_v21, %v1363_v40  ;;  %v1343_v46 = vsel %vm282_vm0, %v1342_v38, %v1202_v22  ;;  %v1352_v47 = vrot.slane %v1208_v36, 2  ;;  %v1354_v48 = vrot.slane %v1209_v37, 1  ;;  %v1227_v49 = vld [vmem:[%s4754_s4 + $0x14a] sm:$0x1]  ;;  %v1228_v50 = vld [vmem:[%s4754_s4 + $0x152] sm:$0x1] }
  0x8d   : > { %v1367_v51 = vsel %vm297_vm5, %v1366_v25, %v1365_v45  ;;  %v1345_v52 = vsel %vm285_vm1, %v1344_v39, %v1343_v46  ;;  %v1229_v53 = vld [vmem:[%s4754_s4 + $0x15a] sm:$0x1]  ;;  %v1230_v54 = vld [vmem:[%s4754_s4 + $0x162] sm:$0x1]  ;;  %v1231_v55 = vld [vmem:[%s4754_s4 + $0x16a] sm:$0x1] }
  0x8e   : > { %v1369_v56 = vsel %vm300_vm6, %v1368_v26, %v1367_v51  ;;  %v1347_v57 = vsel %vm288_vm2, %v1346_v41, %v1345_v52  ;;  %v1232_v58 = vld [vmem:[%s4754_s4 + $0x172] sm:$0x1]  ;;  %v1233_v59 = vld [vmem:[%s4754_s4 + $0x17a] sm:$0x1]  ;;  %v1384_v60 = vrot.slane %v1227_v49, 7  ;;  %v1386_v61 = vrot.slane %v1228_v50, 6 }
  0x8f   : > { %1530 = vxpose.xlu1.b32.start.end [1/1] (short) (narrow) %v1369_v56, 8  ;;  %v1349_v62 = vsel %vm291_vm3, %v1348_v42, %v1347_v57  ;;  %v1388_v63 = vrot.slane %v1229_v53, 5  ;;  %v1390_v0 = vrot.slane %v1230_v54, 4  ;;  %v1392_v1 = vrot.slane %v1231_v55, 3  ;;  %v1218_v2 = vld [vmem:[%s4754_s4 + $0x102] sm:$0x1] }
  0x90   : > { %v1351_v3 = vsel %vm294_vm4, %v1350_v43, %v1349_v62  ;;  %v1385_v4 = vsel %vm282_vm0, %v1384_v60, %v1226_v44  ;;  %v1394_v5 = vrot.slane %v1232_v58, 2  ;;  %v1396_v6 = vrot.slane %v1233_v59, 1  ;;  %v1219_v7 = vld [vmem:[%s4754_s4 + $0x10a] sm:$0x1]  ;;  %v1220_v8 = vld [vmem:[%s4754_s4 + $0x112] sm:$0x1] }
  0x91   : > { %v1353_v9 = vsel %vm297_vm5, %v1352_v47, %v1351_v3  ;;  %v1387_v10 = vsel %vm285_vm1, %v1386_v61, %v1385_v4  ;;  %v1221_v11 = vld [vmem:[%s4754_s4 + $0x11a] sm:$0x1]  ;;  %v1222_v12 = vld [vmem:[%s4754_s4 + $0x122] sm:$0x1]  ;;  %v1223_v13 = vld [vmem:[%s4754_s4 + $0x12a] sm:$0x1] }
  0x92   : > { %v1355_v14 = vsel %vm300_vm6, %v1354_v48, %v1353_v9  ;;  %v1389_v15 = vsel %vm288_vm2, %v1388_v63, %v1387_v10  ;;  %v1224_v16 = vld [vmem:[%s4754_s4 + $0x132] sm:$0x1]  ;;  %v1225_v17 = vld [vmem:[%s4754_s4 + $0x13a] sm:$0x1]  ;;  %v1370_v18 = vrot.slane %v1219_v7, 7  ;;  %v1372_v19 = vrot.slane %v1220_v8, 6 }
  0x93   : > { %1498 = vxpose.xlu0.b32.start.end [1/1] (short) (narrow) %v1355_v14, 8  ;;  %v1391_v20 = vsel %vm291_vm3, %v1390_v0, %v1389_v15  ;;  %v1374_v21 = vrot.slane %v1221_v11, 5  ;;  %v1376_v22 = vrot.slane %v1222_v12, 4  ;;  %v1378_v23 = vrot.slane %v1223_v13, 3  ;;  %v1242_v24 = vld [vmem:[%s4754_s4 + $0x1c2] sm:$0x1] }
  0x94   : > { %v1393_v25 = vsel %vm294_vm4, %v1392_v1, %v1391_v20  ;;  %v1371_v26 = vsel %vm282_vm0, %v1370_v18, %v1218_v2  ;;  %v1380_v27 = vrot.slane %v1224_v16, 2  ;;  %v1382_v28 = vrot.slane %v1225_v17, 1  ;;  %v1243_v29 = vld [vmem:[%s4754_s4 + $0x1ca] sm:$0x1]  ;;  %v1244_v30 = vld [vmem:[%s4754_s4 + $0x1d2] sm:$0x1] }
  0x95   : > { %v1395_v31 = vsel %vm297_vm5, %v1394_v5, %v1393_v25  ;;  %v1373_v32 = vsel %vm285_vm1, %v1372_v19, %v1371_v26  ;;  %v1245_v33 = vld [vmem:[%s4754_s4 + $0x1da] sm:$0x1]  ;;  %v1246_v34 = vld [vmem:[%s4754_s4 + $0x1e2] sm:$0x1]  ;;  %v1247_v35 = vld [vmem:[%s4754_s4 + $0x1ea] sm:$0x1] }
  0x96   : > { %v1397_v36 = vsel %vm300_vm6, %v1396_v6, %v1395_v31  ;;  %v1375_v37 = vsel %vm288_vm2, %v1374_v21, %v1373_v32  ;;  %v1248_v38 = vld [vmem:[%s4754_s4 + $0x1f2] sm:$0x1]  ;;  %v1249_v39 = vld [vmem:[%s4754_s4 + $0x1fa] sm:$0x1]  ;;  %v1412_v40 = vrot.slane %v1243_v29, 7  ;;  %v1414_v41 = vrot.slane %v1244_v30, 6 }
  0x97   : > { %1594 = vxpose.xlu1.b32.start.end [1/1] (short) (narrow) %v1397_v36, 8  ;;  %v1377_v42 = vsel %vm291_vm3, %v1376_v22, %v1375_v37  ;;  %v1416_v43 = vrot.slane %v1245_v33, 5  ;;  %v1418_v44 = vrot.slane %v1246_v34, 4  ;;  %v1420_v45 = vrot.slane %v1247_v35, 3  ;;  %v1234_v46 = vld [vmem:[%s4754_s4 + $0x182] sm:$0x1] }
  0x98   : > { %v1379_v47 = vsel %vm294_vm4, %v1378_v23, %v1377_v42  ;;  %v1413_v48 = vsel %vm282_vm0, %v1412_v40, %v1242_v24  ;;  %v1422_v49 = vrot.slane %v1248_v38, 2  ;;  %v1424_v50 = vrot.slane %v1249_v39, 1  ;;  %v1235_v51 = vld [vmem:[%s4754_s4 + $0x18a] sm:$0x1]  ;;  %v1236_v52 = vld [vmem:[%s4754_s4 + $0x192] sm:$0x1] }
  0x99   : > { %v1381_v53 = vsel %vm297_vm5, %v1380_v27, %v1379_v47  ;;  %v1415_v54 = vsel %vm285_vm1, %v1414_v41, %v1413_v48  ;;  %v1237_v55 = vld [vmem:[%s4754_s4 + $0x19a] sm:$0x1]  ;;  %v1238_v56 = vld [vmem:[%s4754_s4 + $0x1a2] sm:$0x1]  ;;  %v1239_v57 = vld [vmem:[%s4754_s4 + $0x1aa] sm:$0x1] }
  0x9a   : > { %v1383_v58 = vsel %vm300_vm6, %v1382_v28, %v1381_v53  ;;  %v1417_v59 = vsel %vm288_vm2, %v1416_v43, %v1415_v54  ;;  %v1240_v60 = vld [vmem:[%s4754_s4 + $0x1b2] sm:$0x1]  ;;  %v1241_v61 = vld [vmem:[%s4754_s4 + $0x1ba] sm:$0x1]  ;;  %v1398_v62 = vrot.slane %v1235_v51, 7  ;;  %v1400_v63 = vrot.slane %v1236_v52, 6 }
  0x9b   : > { %1562 = vxpose.xlu0.b32.start.end [1/1] (short) (narrow) %v1383_v58, 8  ;;  %v1419_v0 = vsel %vm291_vm3, %v1418_v44, %v1417_v59  ;;  %v1402_v1 = vrot.slane %v1237_v55, 5  ;;  %v1404_v2 = vrot.slane %v1238_v56, 4  ;;  %v1406_v3 = vrot.slane %v1239_v57, 3  ;;  %v1707_v4 = vld [vmem:[%s4754_s4 + $0x43] sm:$0x1] }
  0x9c   : > { %v1421_v5 = vsel %vm294_vm4, %v1420_v45, %v1419_v0  ;;  %v1399_v6 = vsel %vm282_vm0, %v1398_v62, %v1234_v46  ;;  %v1408_v7 = vrot.slane %v1240_v60, 2  ;;  %v1410_v8 = vrot.slane %v1241_v61, 1  ;;  %v1708_v9 = vld [vmem:[%s4754_s4 + $0x4b] sm:$0x1]  ;;  %v1709_v10 = vld [vmem:[%s4754_s4 + $0x53] sm:$0x1] }
  0x9d   : > { %v1423_v11 = vsel %vm297_vm5, %v1422_v49, %v1421_v5  ;;  %v1401_v12 = vsel %vm285_vm1, %v1400_v63, %v1399_v6  ;;  %v1710_v13 = vld [vmem:[%s4754_s4 + $0x5b] sm:$0x1]  ;;  %v1711_v14 = vld [vmem:[%s4754_s4 + $0x63] sm:$0x1]  ;;  %v1712_v15 = vld [vmem:[%s4754_s4 + $0x6b] sm:$0x1] }
  0x9e   : > { %v1425_v16 = vsel %vm300_vm6, %v1424_v50, %v1423_v11  ;;  %v1403_v17 = vsel %vm288_vm2, %v1402_v1, %v1401_v12  ;;  %v1713_v18 = vld [vmem:[%s4754_s4 + $0x73] sm:$0x1]  ;;  %v1714_v19 = vld [vmem:[%s4754_s4 + $0x7b] sm:$0x1]  ;;  %v1841_v20 = vrot.slane %v1708_v9, 7  ;;  %v1843_v21 = vrot.slane %v1709_v10, 6 }
  0x9f   : > { %1658 = vxpose.xlu1.b32.start.end [1/1] (short) (narrow) %v1425_v16, 8  ;;  %v1405_v22 = vsel %vm291_vm3, %v1404_v2, %v1403_v17  ;;  %v1845_v23 = vrot.slane %v1710_v13, 5  ;;  %v1847_v24 = vrot.slane %v1711_v14, 4  ;;  %v1849_v25 = vrot.slane %v1712_v15, 3  ;;  %v1699_v26 = vld [vmem:[%s4754_s4 + $0x3] sm:$0x1] }
  0xa0   : > { %v1407_v27 = vsel %vm294_vm4, %v1406_v3, %v1405_v22  ;;  %v1842_v28 = vsel %vm282_vm0, %v1841_v20, %v1707_v4  ;;  %v1851_v29 = vrot.slane %v1713_v18, 2  ;;  %v1853_v30 = vrot.slane %v1714_v19, 1  ;;  %v1700_v31 = vld [vmem:[%s4754_s4 + $0xb] sm:$0x1]  ;;  %v1701_v32 = vld [vmem:[%s4754_s4 + $0x13] sm:$0x1] }
  0xa1   : > { %v1409_v33 = vsel %vm297_vm5, %v1408_v7, %v1407_v27  ;;  %v1844_v34 = vsel %vm285_vm1, %v1843_v21, %v1842_v28  ;;  %v1702_v35 = vld [vmem:[%s4754_s4 + $0x1b] sm:$0x1]  ;;  %v1703_v36 = vld [vmem:[%s4754_s4 + $0x23] sm:$0x1]  ;;  %v1704_v37 = vld [vmem:[%s4754_s4 + $0x2b] sm:$0x1] }
  0xa2   : > { %v1411_v38 = vsel %vm300_vm6, %v1410_v8, %v1409_v33  ;;  %v1846_v39 = vsel %vm288_vm2, %v1845_v23, %v1844_v34  ;;  %v1705_v40 = vld [vmem:[%s4754_s4 + $0x33] sm:$0x1]  ;;  %v1706_v41 = vld [vmem:[%s4754_s4 + $0x3b] sm:$0x1]  ;;  %v1827_v42 = vrot.slane %v1700_v31, 7  ;;  %v1829_v43 = vrot.slane %v1701_v32, 6 }
  0xa3   : > { %1626 = vxpose.xlu0.b32.start.end [1/1] (short) (narrow) %v1411_v38, 8  ;;  %v1848_v44 = vsel %vm291_vm3, %v1847_v24, %v1846_v39  ;;  %v1831_v45 = vrot.slane %v1702_v35, 5  ;;  %v1833_v46 = vrot.slane %v1703_v36, 4  ;;  %v1835_v47 = vrot.slane %v1704_v37, 3  ;;  %v1723_v48 = vld [vmem:[%s4754_s4 + $0xc3] sm:$0x1] }
  0xa4   : > { %v1850_v49 = vsel %vm294_vm4, %v1849_v25, %v1848_v44  ;;  %v1828_v50 = vsel %vm282_vm0, %v1827_v42, %v1699_v26  ;;  %v1837_v51 = vrot.slane %v1705_v40, 2  ;;  %v1839_v52 = vrot.slane %v1706_v41, 1  ;;  %v1724_v53 = vld [vmem:[%s4754_s4 + $0xcb] sm:$0x1]  ;;  %v1725_v54 = vld [vmem:[%s4754_s4 + $0xd3] sm:$0x1] }
  0xa5   : > { %v1852_v55 = vsel %vm297_vm5, %v1851_v29, %v1850_v49  ;;  %v1830_v56 = vsel %vm285_vm1, %v1829_v43, %v1828_v50  ;;  %v1726_v57 = vld [vmem:[%s4754_s4 + $0xdb] sm:$0x1]  ;;  %v1727_v58 = vld [vmem:[%s4754_s4 + $0xe3] sm:$0x1]  ;;  %v1728_v59 = vld [vmem:[%s4754_s4 + $0xeb] sm:$0x1] }
  0xa6   : > { %v1854_v60 = vsel %vm300_vm6, %v1853_v30, %v1852_v55  ;;  %v1832_v61 = vsel %vm288_vm2, %v1831_v45, %v1830_v56  ;;  %v1729_v62 = vld [vmem:[%s4754_s4 + $0xf3] sm:$0x1]  ;;  %v1730_v63 = vld [vmem:[%s4754_s4 + $0xfb] sm:$0x1]  ;;  %v1869_v0 = vrot.slane %v1724_v53, 7  ;;  %v1871_v1 = vrot.slane %v1725_v54, 6 }
  0xa7   : > { %1979 = vxpose.xlu1.b32.start.end [1/1] (short) (narrow) %v1854_v60, 8  ;;  %v1834_v2 = vsel %vm291_vm3, %v1833_v46, %v1832_v61  ;;  %v1873_v3 = vrot.slane %v1726_v57, 5  ;;  %v1875_v4 = vrot.slane %v1727_v58, 4  ;;  %v1877_v5 = vrot.slane %v1728_v59, 3  ;;  %v1715_v6 = vld [vmem:[%s4754_s4 + $0x83] sm:$0x1] }
  0xa8   : > { %v1836_v7 = vsel %vm294_vm4, %v1835_v47, %v1834_v2  ;;  %v1870_v8 = vsel %vm282_vm0, %v1869_v0, %v1723_v48  ;;  %v1879_v9 = vrot.slane %v1729_v62, 2  ;;  %v1881_v10 = vrot.slane %v1730_v63, 1  ;;  %v1716_v11 = vld [vmem:[%s4754_s4 + $0x8b] sm:$0x1]  ;;  %v1717_v12 = vld [vmem:[%s4754_s4 + $0x93] sm:$0x1] }
  0xa9   : > { %v1838_v13 = vsel %vm297_vm5, %v1837_v51, %v1836_v7  ;;  %v1872_v14 = vsel %vm285_vm1, %v1871_v1, %v1870_v8  ;;  %v1718_v15 = vld [vmem:[%s4754_s4 + $0x9b] sm:$0x1]  ;;  %v1719_v16 = vld [vmem:[%s4754_s4 + $0xa3] sm:$0x1]  ;;  %v1720_v17 = vld [vmem:[%s4754_s4 + $0xab] sm:$0x1] }
  0xaa   : > { %v1840_v18 = vsel %vm300_vm6, %v1839_v52, %v1838_v13  ;;  %v1874_v19 = vsel %vm288_vm2, %v1873_v3, %v1872_v14  ;;  %v1721_v20 = vld [vmem:[%s4754_s4 + $0xb3] sm:$0x1]  ;;  %v1722_v21 = vld [vmem:[%s4754_s4 + $0xbb] sm:$0x1]  ;;  %v1855_v22 = vrot.slane %v1716_v11, 7  ;;  %v1857_v23 = vrot.slane %v1717_v12, 6 }
  0xab   : > { %1947 = vxpose.xlu0.b32.start.end [1/1] (short) (narrow) %v1840_v18, 8  ;;  %v1876_v24 = vsel %vm291_vm3, %v1875_v4, %v1874_v19  ;;  %v1859_v25 = vrot.slane %v1718_v15, 5  ;;  %v1861_v26 = vrot.slane %v1719_v16, 4  ;;  %v1863_v27 = vrot.slane %v1720_v17, 3  ;;  %v1739_v28 = vld [vmem:[%s4754_s4 + $0x143] sm:$0x1] }
  0xac   : > { %v1878_v29 = vsel %vm294_vm4, %v1877_v5, %v1876_v24  ;;  %v1856_v30 = vsel %vm282_vm0, %v1855_v22, %v1715_v6  ;;  %v1865_v31 = vrot.slane %v1721_v20, 2  ;;  %v1867_v32 = vrot.slane %v1722_v21, 1  ;;  %v1740_v33 = vld [vmem:[%s4754_s4 + $0x14b] sm:$0x1]  ;;  %v1741_v34 = vld [vmem:[%s4754_s4 + $0x153] sm:$0x1] }
  0xad   : > { %v1880_v35 = vsel %vm297_vm5, %v1879_v9, %v1878_v29  ;;  %v1858_v36 = vsel %vm285_vm1, %v1857_v23, %v1856_v30  ;;  %v1742_v37 = vld [vmem:[%s4754_s4 + $0x15b] sm:$0x1]  ;;  %v1743_v38 = vld [vmem:[%s4754_s4 + $0x163] sm:$0x1]  ;;  %v1744_v39 = vld [vmem:[%s4754_s4 + $0x16b] sm:$0x1] }
  0xae   : > { %v1882_v40 = vsel %vm300_vm6, %v1881_v10, %v1880_v35  ;;  %v1860_v41 = vsel %vm288_vm2, %v1859_v25, %v1858_v36  ;;  %v1745_v42 = vld [vmem:[%s4754_s4 + $0x173] sm:$0x1]  ;;  %v1746_v43 = vld [vmem:[%s4754_s4 + $0x17b] sm:$0x1]  ;;  %v1897_v44 = vrot.slane %v1740_v33, 7  ;;  %v1899_v45 = vrot.slane %v1741_v34, 6 }
  0xaf   : > { %2043 = vxpose.xlu1.b32.start.end [1/1] (short) (narrow) %v1882_v40, 8  ;;  %v1862_v46 = vsel %vm291_vm3, %v1861_v26, %v1860_v41  ;;  %v1901_v47 = vrot.slane %v1742_v37, 5  ;;  %v1903_v48 = vrot.slane %v1743_v38, 4  ;;  %v1905_v49 = vrot.slane %v1744_v39, 3  ;;  %v1731_v50 = vld [vmem:[%s4754_s4 + $0x103] sm:$0x1] }
  0xb0   : > { %v1864_v51 = vsel %vm294_vm4, %v1863_v27, %v1862_v46  ;;  %v1898_v52 = vsel %vm282_vm0, %v1897_v44, %v1739_v28  ;;  %v1907_v53 = vrot.slane %v1745_v42, 2  ;;  %v1909_v54 = vrot.slane %v1746_v43, 1  ;;  %v1732_v55 = vld [vmem:[%s4754_s4 + $0x10b] sm:$0x1]  ;;  %v1733_v56 = vld [vmem:[%s4754_s4 + $0x113] sm:$0x1] }
  0xb1   : > { %v1866_v57 = vsel %vm297_vm5, %v1865_v31, %v1864_v51  ;;  %v1900_v58 = vsel %vm285_vm1, %v1899_v45, %v1898_v52  ;;  %v1734_v59 = vld [vmem:[%s4754_s4 + $0x11b] sm:$0x1]  ;;  %v1735_v60 = vld [vmem:[%s4754_s4 + $0x123] sm:$0x1]  ;;  %v1736_v61 = vld [vmem:[%s4754_s4 + $0x12b] sm:$0x1] }
  0xb2   : > { %v1868_v62 = vsel %vm300_vm6, %v1867_v32, %v1866_v57  ;;  %v1902_v63 = vsel %vm288_vm2, %v1901_v47, %v1900_v58  ;;  %v1737_v0 = vld [vmem:[%s4754_s4 + $0x133] sm:$0x1]  ;;  %v1738_v1 = vld [vmem:[%s4754_s4 + $0x13b] sm:$0x1]  ;;  %v1883_v2 = vrot.slane %v1732_v55, 7  ;;  %v1885_v3 = vrot.slane %v1733_v56, 6 }
  0xb3   : > { %2011 = vxpose.xlu0.b32.start.end [1/1] (short) (narrow) %v1868_v62, 8  ;;  %v1904_v4 = vsel %vm291_vm3, %v1903_v48, %v1902_v63  ;;  %v1887_v5 = vrot.slane %v1734_v59, 5  ;;  %v1889_v6 = vrot.slane %v1735_v60, 4  ;;  %v1891_v7 = vrot.slane %v1736_v61, 3  ;;  %v1755_v8 = vld [vmem:[%s4754_s4 + $0x1c3] sm:$0x1] }
  0xb4   : > { %v1906_v9 = vsel %vm294_vm4, %v1905_v49, %v1904_v4  ;;  %v1884_v10 = vsel %vm282_vm0, %v1883_v2, %v1731_v50  ;;  %v1893_v11 = vrot.slane %v1737_v0, 2  ;;  %v1895_v12 = vrot.slane %v1738_v1, 1  ;;  %v1756_v13 = vld [vmem:[%s4754_s4 + $0x1cb] sm:$0x1]  ;;  %v1757_v14 = vld [vmem:[%s4754_s4 + $0x1d3] sm:$0x1] }
  0xb5   : > { %v1908_v15 = vsel %vm297_vm5, %v1907_v53, %v1906_v9  ;;  %v1886_v16 = vsel %vm285_vm1, %v1885_v3, %v1884_v10  ;;  %v1758_v17 = vld [vmem:[%s4754_s4 + $0x1db] sm:$0x1]  ;;  %v1759_v18 = vld [vmem:[%s4754_s4 + $0x1e3] sm:$0x1]  ;;  %v1760_v19 = vld [vmem:[%s4754_s4 + $0x1eb] sm:$0x1] }
  0xb6   : > { %v1910_v20 = vsel %vm300_vm6, %v1909_v54, %v1908_v15  ;;  %v1888_v21 = vsel %vm288_vm2, %v1887_v5, %v1886_v16  ;;  %v1761_v22 = vld [vmem:[%s4754_s4 + $0x1f3] sm:$0x1]  ;;  %v1762_v23 = vld [vmem:[%s4754_s4 + $0x1fb] sm:$0x1]  ;;  %v1925_v24 = vrot.slane %v1756_v13, 7  ;;  %v1927_v25 = vrot.slane %v1757_v14, 6 }
  0xb7   : > { %2107 = vxpose.xlu1.b32.start.end [1/1] (short) (narrow) %v1910_v20, 8  ;;  %v1890_v26 = vsel %vm291_vm3, %v1889_v6, %v1888_v21  ;;  %v1929_v27 = vrot.slane %v1758_v17, 5  ;;  %v1931_v28 = vrot.slane %v1759_v18, 4  ;;  %v1933_v29 = vrot.slane %v1760_v19, 3  ;;  %v1747_v30 = vld [vmem:[%s4754_s4 + $0x183] sm:$0x1] }
  0xb8   : > { %v1892_v31 = vsel %vm294_vm4, %v1891_v7, %v1890_v26  ;;  %v1926_v32 = vsel %vm282_vm0, %v1925_v24, %v1755_v8  ;;  %v1935_v33 = vrot.slane %v1761_v22, 2  ;;  %v1937_v34 = vrot.slane %v1762_v23, 1  ;;  %v1748_v35 = vld [vmem:[%s4754_s4 + $0x18b] sm:$0x1]  ;;  %v1749_v36 = vld [vmem:[%s4754_s4 + $0x193] sm:$0x1] }
  0xb9   : > { %v1894_v37 = vsel %vm297_vm5, %v1893_v11, %v1892_v31  ;;  %v1928_v38 = vsel %vm285_vm1, %v1927_v25, %v1926_v32  ;;  %v1750_v39 = vld [vmem:[%s4754_s4 + $0x19b] sm:$0x1]  ;;  %v1751_v40 = vld [vmem:[%s4754_s4 + $0x1a3] sm:$0x1]  ;;  %v1752_v41 = vld [vmem:[%s4754_s4 + $0x1ab] sm:$0x1] }
  0xba   : > { %v1896_v42 = vsel %vm300_vm6, %v1895_v12, %v1894_v37  ;;  %v1930_v43 = vsel %vm288_vm2, %v1929_v27, %v1928_v38  ;;  %v1753_v44 = vld [vmem:[%s4754_s4 + $0x1b3] sm:$0x1]  ;;  %v1754_v45 = vld [vmem:[%s4754_s4 + $0x1bb] sm:$0x1]  ;;  %v1911_v46 = vrot.slane %v1748_v35, 7  ;;  %v1913_v47 = vrot.slane %v1749_v36, 6 }
  0xbb   : > { %2075 = vxpose.xlu0.b32.start.end [1/1] (short) (narrow) %v1896_v42, 8  ;;  %v1932_v48 = vsel %vm291_vm3, %v1931_v28, %v1930_v43  ;;  %v1915_v49 = vrot.slane %v1750_v39, 5  ;;  %v1917_v50 = vrot.slane %v1751_v40, 4  ;;  %v1919_v51 = vrot.slane %v1752_v41, 3  ;;  %v2220_v52 = vld [vmem:[%s4754_s4 + $0x44] sm:$0x1] }
  0xbc   : > { %v1934_v53 = vsel %vm294_vm4, %v1933_v29, %v1932_v48  ;;  %v1912_v54 = vsel %vm282_vm0, %v1911_v46, %v1747_v30  ;;  %v1921_v55 = vrot.slane %v1753_v44, 2  ;;  %v1923_v56 = vrot.slane %v1754_v45, 1  ;;  %v2221_v57 = vld [vmem:[%s4754_s4 + $0x4c] sm:$0x1]  ;;  %v2222_v58 = vld [vmem:[%s4754_s4 + $0x54] sm:$0x1] }
  0xbd   : > { %v1936_v59 = vsel %vm297_vm5, %v1935_v33, %v1934_v53  ;;  %v1914_v60 = vsel %vm285_vm1, %v1913_v47, %v1912_v54  ;;  %v2223_v61 = vld [vmem:[%s4754_s4 + $0x5c] sm:$0x1]  ;;  %v2224_v62 = vld [vmem:[%s4754_s4 + $0x64] sm:$0x1]  ;;  %v2225_v63 = vld [vmem:[%s4754_s4 + $0x6c] sm:$0x1] }
  0xbe   : > { %v1938_v0 = vsel %vm300_vm6, %v1937_v34, %v1936_v59  ;;  %v1916_v1 = vsel %vm288_vm2, %v1915_v49, %v1914_v60  ;;  %v2226_v2 = vld [vmem:[%s4754_s4 + $0x74] sm:$0x1]  ;;  %v2227_v3 = vld [vmem:[%s4754_s4 + $0x7c] sm:$0x1]  ;;  %v2354_v4 = vrot.slane %v2221_v57, 7  ;;  %v2356_v5 = vrot.slane %v2222_v58, 6 }
  0xbf   : > { %2171 = vxpose.xlu1.b32.start.end [1/1] (short) (narrow) %v1938_v0, 8  ;;  %v1918_v6 = vsel %vm291_vm3, %v1917_v50, %v1916_v1  ;;  %v2358_v7 = vrot.slane %v2223_v61, 5  ;;  %v2360_v8 = vrot.slane %v2224_v62, 4  ;;  %v2362_v9 = vrot.slane %v2225_v63, 3  ;;  %v2212_v10 = vld [vmem:[%s4754_s4 + $0x4] sm:$0x1] }
  0xc0   : > { %v1920_v11 = vsel %vm294_vm4, %v1919_v51, %v1918_v6  ;;  %v2355_v12 = vsel %vm282_vm0, %v2354_v4, %v2220_v52  ;;  %v2364_v13 = vrot.slane %v2226_v2, 2  ;;  %v2366_v14 = vrot.slane %v2227_v3, 1  ;;  %v2213_v15 = vld [vmem:[%s4754_s4 + $0xc] sm:$0x1]  ;;  %v2214_v16 = vld [vmem:[%s4754_s4 + $0x14] sm:$0x1] }
  0xc1   : > { %v1922_v17 = vsel %vm297_vm5, %v1921_v55, %v1920_v11  ;;  %v2357_v18 = vsel %vm285_vm1, %v2356_v5, %v2355_v12  ;;  %v2215_v19 = vld [vmem:[%s4754_s4 + $0x1c] sm:$0x1]  ;;  %v2216_v20 = vld [vmem:[%s4754_s4 + $0x24] sm:$0x1]  ;;  %v2217_v21 = vld [vmem:[%s4754_s4 + $0x2c] sm:$0x1] }
  0xc2   : > { %v1924_v22 = vsel %vm300_vm6, %v1923_v56, %v1922_v17  ;;  %v2359_v23 = vsel %vm288_vm2, %v2358_v7, %v2357_v18  ;;  %v2218_v24 = vld [vmem:[%s4754_s4 + $0x34] sm:$0x1]  ;;  %v2219_v25 = vld [vmem:[%s4754_s4 + $0x3c] sm:$0x1]  ;;  %v2340_v26 = vrot.slane %v2213_v15, 7  ;;  %v2342_v27 = vrot.slane %v2214_v16, 6 }
  0xc3   : > { %2139 = vxpose.xlu0.b32.start.end [1/1] (short) (narrow) %v1924_v22, 8  ;;  %v2361_v28 = vsel %vm291_vm3, %v2360_v8, %v2359_v23  ;;  %v2344_v29 = vrot.slane %v2215_v19, 5  ;;  %v2346_v30 = vrot.slane %v2216_v20, 4  ;;  %v2348_v31 = vrot.slane %v2217_v21, 3  ;;  %v2236_v32 = vld [vmem:[%s4754_s4 + $0xc4] sm:$0x1] }
  0xc4   : > { %v2363_v33 = vsel %vm294_vm4, %v2362_v9, %v2361_v28  ;;  %v2341_v34 = vsel %vm282_vm0, %v2340_v26, %v2212_v10  ;;  %v2350_v35 = vrot.slane %v2218_v24, 2  ;;  %v2352_v36 = vrot.slane %v2219_v25, 1  ;;  %v2237_v37 = vld [vmem:[%s4754_s4 + $0xcc] sm:$0x1]  ;;  %v2238_v38 = vld [vmem:[%s4754_s4 + $0xd4] sm:$0x1] }
  0xc5   : > { %v2365_v39 = vsel %vm297_vm5, %v2364_v13, %v2363_v33  ;;  %v2343_v40 = vsel %vm285_vm1, %v2342_v27, %v2341_v34  ;;  %v2239_v41 = vld [vmem:[%s4754_s4 + $0xdc] sm:$0x1]  ;;  %v2240_v42 = vld [vmem:[%s4754_s4 + $0xe4] sm:$0x1]  ;;  %v2241_v43 = vld [vmem:[%s4754_s4 + $0xec] sm:$0x1] }
  0xc6   : > { %v2367_v44 = vsel %vm300_vm6, %v2366_v14, %v2365_v39  ;;  %v2345_v45 = vsel %vm288_vm2, %v2344_v29, %v2343_v40  ;;  %v2242_v46 = vld [vmem:[%s4754_s4 + $0xf4] sm:$0x1]  ;;  %v2243_v47 = vld [vmem:[%s4754_s4 + $0xfc] sm:$0x1]  ;;  %v2382_v48 = vrot.slane %v2237_v37, 7  ;;  %v2384_v49 = vrot.slane %v2238_v38, 6 }
  0xc7   : > { %2492 = vxpose.xlu1.b32.start.end [1/1] (short) (narrow) %v2367_v44, 8  ;;  %v2347_v50 = vsel %vm291_vm3, %v2346_v30, %v2345_v45  ;;  %v2386_v51 = vrot.slane %v2239_v41, 5  ;;  %v2388_v52 = vrot.slane %v2240_v42, 4  ;;  %v2390_v53 = vrot.slane %v2241_v43, 3  ;;  %v2228_v54 = vld [vmem:[%s4754_s4 + $0x84] sm:$0x1] }
  0xc8   : > { %v2349_v55 = vsel %vm294_vm4, %v2348_v31, %v2347_v50  ;;  %v2383_v56 = vsel %vm282_vm0, %v2382_v48, %v2236_v32  ;;  %v2392_v57 = vrot.slane %v2242_v46, 2  ;;  %v2394_v58 = vrot.slane %v2243_v47, 1  ;;  %v2229_v59 = vld [vmem:[%s4754_s4 + $0x8c] sm:$0x1]  ;;  %v2230_v60 = vld [vmem:[%s4754_s4 + $0x94] sm:$0x1] }
  0xc9   : > { %v2351_v61 = vsel %vm297_vm5, %v2350_v35, %v2349_v55  ;;  %v2385_v62 = vsel %vm285_vm1, %v2384_v49, %v2383_v56  ;;  %v2231_v63 = vld [vmem:[%s4754_s4 + $0x9c] sm:$0x1]  ;;  %v2232_v0 = vld [vmem:[%s4754_s4 + $0xa4] sm:$0x1]  ;;  %v2233_v1 = vld [vmem:[%s4754_s4 + $0xac] sm:$0x1] }
  0xca   : > { %v2353_v2 = vsel %vm300_vm6, %v2352_v36, %v2351_v61  ;;  %v2387_v3 = vsel %vm288_vm2, %v2386_v51, %v2385_v62  ;;  %v2234_v4 = vld [vmem:[%s4754_s4 + $0xb4] sm:$0x1]  ;;  %v2235_v5 = vld [vmem:[%s4754_s4 + $0xbc] sm:$0x1]  ;;  %v2368_v6 = vrot.slane %v2229_v59, 7  ;;  %v2370_v7 = vrot.slane %v2230_v60, 6 }
  0xcb   : > { %2460 = vxpose.xlu0.b32.start.end [1/1] (short) (narrow) %v2353_v2, 8  ;;  %v2389_v8 = vsel %vm291_vm3, %v2388_v52, %v2387_v3  ;;  %v2372_v9 = vrot.slane %v2231_v63, 5  ;;  %v2374_v10 = vrot.slane %v2232_v0, 4  ;;  %v2376_v11 = vrot.slane %v2233_v1, 3  ;;  %v2252_v12 = vld [vmem:[%s4754_s4 + $0x144] sm:$0x1] }
  0xcc   : > { %v2391_v13 = vsel %vm294_vm4, %v2390_v53, %v2389_v8  ;;  %v2369_v14 = vsel %vm282_vm0, %v2368_v6, %v2228_v54  ;;  %v2378_v15 = vrot.slane %v2234_v4, 2  ;;  %v2380_v16 = vrot.slane %v2235_v5, 1  ;;  %v2253_v17 = vld [vmem:[%s4754_s4 + $0x14c] sm:$0x1]  ;;  %v2254_v18 = vld [vmem:[%s4754_s4 + $0x154] sm:$0x1] }
  0xcd   : > { %v2393_v19 = vsel %vm297_vm5, %v2392_v57, %v2391_v13  ;;  %v2371_v20 = vsel %vm285_vm1, %v2370_v7, %v2369_v14  ;;  %v2255_v21 = vld [vmem:[%s4754_s4 + $0x15c] sm:$0x1]  ;;  %v2256_v22 = vld [vmem:[%s4754_s4 + $0x164] sm:$0x1]  ;;  %v2257_v23 = vld [vmem:[%s4754_s4 + $0x16c] sm:$0x1] }
  0xce   : > { %v2395_v24 = vsel %vm300_vm6, %v2394_v58, %v2393_v19  ;;  %v2373_v25 = vsel %vm288_vm2, %v2372_v9, %v2371_v20  ;;  %v2258_v26 = vld [vmem:[%s4754_s4 + $0x174] sm:$0x1]  ;;  %v2259_v27 = vld [vmem:[%s4754_s4 + $0x17c] sm:$0x1]  ;;  %v2410_v28 = vrot.slane %v2253_v17, 7  ;;  %v2412_v29 = vrot.slane %v2254_v18, 6 }
  0xcf   : > { %2556 = vxpose.xlu1.b32.start.end [1/1] (short) (narrow) %v2395_v24, 8  ;;  %v2375_v30 = vsel %vm291_vm3, %v2374_v10, %v2373_v25  ;;  %v2414_v31 = vrot.slane %v2255_v21, 5  ;;  %v2416_v32 = vrot.slane %v2256_v22, 4  ;;  %v2418_v33 = vrot.slane %v2257_v23, 3  ;;  %v2244_v34 = vld [vmem:[%s4754_s4 + $0x104] sm:$0x1] }
  0xd0   : > { %v2377_v35 = vsel %vm294_vm4, %v2376_v11, %v2375_v30  ;;  %v2411_v36 = vsel %vm282_vm0, %v2410_v28, %v2252_v12  ;;  %v2420_v37 = vrot.slane %v2258_v26, 2  ;;  %v2422_v38 = vrot.slane %v2259_v27, 1  ;;  %v2245_v39 = vld [vmem:[%s4754_s4 + $0x10c] sm:$0x1]  ;;  %v2246_v40 = vld [vmem:[%s4754_s4 + $0x114] sm:$0x1] }
  0xd1   : > { %v2379_v41 = vsel %vm297_vm5, %v2378_v15, %v2377_v35  ;;  %v2413_v42 = vsel %vm285_vm1, %v2412_v29, %v2411_v36  ;;  %v2247_v43 = vld [vmem:[%s4754_s4 + $0x11c] sm:$0x1]  ;;  %v2248_v44 = vld [vmem:[%s4754_s4 + $0x124] sm:$0x1]  ;;  %v2249_v45 = vld [vmem:[%s4754_s4 + $0x12c] sm:$0x1] }
  0xd2   : > { %v2381_v46 = vsel %vm300_vm6, %v2380_v16, %v2379_v41  ;;  %v2415_v47 = vsel %vm288_vm2, %v2414_v31, %v2413_v42  ;;  %v2250_v48 = vld [vmem:[%s4754_s4 + $0x134] sm:$0x1]  ;;  %v2251_v49 = vld [vmem:[%s4754_s4 + $0x13c] sm:$0x1]  ;;  %v2396_v50 = vrot.slane %v2245_v39, 7  ;;  %v2398_v51 = vrot.slane %v2246_v40, 6 }
  0xd3   : > { %2524 = vxpose.xlu0.b32.start.end [1/1] (short) (narrow) %v2381_v46, 8  ;;  %v2417_v52 = vsel %vm291_vm3, %v2416_v32, %v2415_v47  ;;  %v2400_v53 = vrot.slane %v2247_v43, 5  ;;  %v2402_v54 = vrot.slane %v2248_v44, 4  ;;  %v2404_v55 = vrot.slane %v2249_v45, 3  ;;  %v2268_v56 = vld [vmem:[%s4754_s4 + $0x1c4] sm:$0x1] }
  0xd4   : > { %v2419_v57 = vsel %vm294_vm4, %v2418_v33, %v2417_v52  ;;  %v2397_v58 = vsel %vm282_vm0, %v2396_v50, %v2244_v34  ;;  %v2406_v59 = vrot.slane %v2250_v48, 2  ;;  %v2408_v60 = vrot.slane %v2251_v49, 1  ;;  %v2269_v61 = vld [vmem:[%s4754_s4 + $0x1cc] sm:$0x1]  ;;  %v2270_v62 = vld [vmem:[%s4754_s4 + $0x1d4] sm:$0x1] }
  0xd5   : > { %v2421_v63 = vsel %vm297_vm5, %v2420_v37, %v2419_v57  ;;  %v2399_v0 = vsel %vm285_vm1, %v2398_v51, %v2397_v58  ;;  %v2271_v1 = vld [vmem:[%s4754_s4 + $0x1dc] sm:$0x1]  ;;  %v2272_v2 = vld [vmem:[%s4754_s4 + $0x1e4] sm:$0x1]  ;;  %v2273_v3 = vld [vmem:[%s4754_s4 + $0x1ec] sm:$0x1] }
  0xd6   : > { %v2423_v4 = vsel %vm300_vm6, %v2422_v38, %v2421_v63  ;;  %v2401_v5 = vsel %vm288_vm2, %v2400_v53, %v2399_v0  ;;  %v2274_v6 = vld [vmem:[%s4754_s4 + $0x1f4] sm:$0x1]  ;;  %v2275_v7 = vld [vmem:[%s4754_s4 + $0x1fc] sm:$0x1]  ;;  %v2438_v8 = vrot.slane %v2269_v61, 7  ;;  %v2440_v9 = vrot.slane %v2270_v62, 6 }
  0xd7   : > { %2620 = vxpose.xlu1.b32.start.end [1/1] (short) (narrow) %v2423_v4, 8  ;;  %v2403_v10 = vsel %vm291_vm3, %v2402_v54, %v2401_v5  ;;  %v2442_v11 = vrot.slane %v2271_v1, 5  ;;  %v2444_v12 = vrot.slane %v2272_v2, 4  ;;  %v2446_v13 = vrot.slane %v2273_v3, 3  ;;  %v2260_v14 = vld [vmem:[%s4754_s4 + $0x184] sm:$0x1] }
  0xd8   : > { %v2405_v15 = vsel %vm294_vm4, %v2404_v55, %v2403_v10  ;;  %v2439_v16 = vsel %vm282_vm0, %v2438_v8, %v2268_v56  ;;  %v2448_v17 = vrot.slane %v2274_v6, 2  ;;  %v2450_v18 = vrot.slane %v2275_v7, 1  ;;  %v2261_v19 = vld [vmem:[%s4754_s4 + $0x18c] sm:$0x1]  ;;  %v2262_v20 = vld [vmem:[%s4754_s4 + $0x194] sm:$0x1] }
  0xd9   : > { %v2407_v21 = vsel %vm297_vm5, %v2406_v59, %v2405_v15  ;;  %v2441_v22 = vsel %vm285_vm1, %v2440_v9, %v2439_v16  ;;  %v2263_v23 = vld [vmem:[%s4754_s4 + $0x19c] sm:$0x1]  ;;  %v2264_v24 = vld [vmem:[%s4754_s4 + $0x1a4] sm:$0x1]  ;;  %v2265_v25 = vld [vmem:[%s4754_s4 + $0x1ac] sm:$0x1] }
  0xda   : > { %v2409_v26 = vsel %vm300_vm6, %v2408_v60, %v2407_v21  ;;  %v2443_v27 = vsel %vm288_vm2, %v2442_v11, %v2441_v22  ;;  %v2266_v28 = vld [vmem:[%s4754_s4 + $0x1b4] sm:$0x1]  ;;  %v2267_v29 = vld [vmem:[%s4754_s4 + $0x1bc] sm:$0x1]  ;;  %v2424_v30 = vrot.slane %v2261_v19, 7  ;;  %v2426_v31 = vrot.slane %v2262_v20, 6 }
  0xdb   : > { %2588 = vxpose.xlu0.b32.start.end [1/1] (short) (narrow) %v2409_v26, 8  ;;  %v2445_v32 = vsel %vm291_vm3, %v2444_v12, %v2443_v27  ;;  %v2428_v33 = vrot.slane %v2263_v23, 5  ;;  %v2430_v34 = vrot.slane %v2264_v24, 4  ;;  %v2432_v35 = vrot.slane %v2265_v25, 3  ;;  %v2733_v36 = vld [vmem:[%s4754_s4 + $0x45] sm:$0x1] }
  0xdc   : > { %v2447_v37 = vsel %vm294_vm4, %v2446_v13, %v2445_v32  ;;  %v2425_v38 = vsel %vm282_vm0, %v2424_v30, %v2260_v14  ;;  %v2434_v39 = vrot.slane %v2266_v28, 2  ;;  %v2436_v40 = vrot.slane %v2267_v29, 1  ;;  %v2734_v41 = vld [vmem:[%s4754_s4 + $0x4d] sm:$0x1]  ;;  %v2735_v42 = vld [vmem:[%s4754_s4 + $0x55] sm:$0x1]  ;;  %v5390_v28 = vpop.trf.xlu1 }
  0xdd   : > { %v2449_v43 = vsel %vm297_vm5, %v2448_v17, %v2447_v37  ;;  %v2427_v44 = vsel %vm285_vm1, %v2426_v31, %v2425_v38  ;;  %v2736_v45 = vld [vmem:[%s4754_s4 + $0x5d] sm:$0x1]  ;;  %v2737_v46 = vld [vmem:[%s4754_s4 + $0x65] sm:$0x1]  ;;  %v2738_v47 = vld [vmem:[%s4754_s4 + $0x6d] sm:$0x1] }
  0xde   : > { %v2451_v48 = vsel %vm300_vm6, %v2450_v18, %v2449_v43  ;;  %v2429_v49 = vsel %vm288_vm2, %v2428_v33, %v2427_v44  ;;  %v2739_v50 = vld [vmem:[%s4754_s4 + $0x75] sm:$0x1]  ;;  %v2740_v51 = vld [vmem:[%s4754_s4 + $0x7d] sm:$0x1]  ;;  %v2867_v52 = vrot.slane %v2734_v41, 7  ;;  %v2869_v53 = vrot.slane %v2735_v42, 6 }
  0xdf   : > { %2684 = vxpose.xlu1.b32.start.end [1/1] (short) (narrow) %v2451_v48, 8  ;;  %v2431_v54 = vsel %vm291_vm3, %v2430_v34, %v2429_v49  ;;  %v2871_v55 = vrot.slane %v2736_v45, 5  ;;  %v2873_v56 = vrot.slane %v2737_v46, 4  ;;  %v2875_v57 = vrot.slane %v2738_v47, 3  ;;  %v2725_v58 = vld [vmem:[%s4754_s4 + $0x5] sm:$0x1] }
  0xe0   : > { %v2433_v59 = vsel %vm294_vm4, %v2432_v35, %v2431_v54  ;;  %v2868_v60 = vsel %vm282_vm0, %v2867_v52, %v2733_v36  ;;  %v2877_v61 = vrot.slane %v2739_v50, 2  ;;  %v2879_v62 = vrot.slane %v2740_v51, 1  ;;  %v2726_v63 = vld [vmem:[%s4754_s4 + $0xd] sm:$0x1]  ;;  %v2727_v0 = vld [vmem:[%s4754_s4 + $0x15] sm:$0x1] }
  0xe1   : > { %v2435_v1 = vsel %vm297_vm5, %v2434_v39, %v2433_v59  ;;  %v2870_v2 = vsel %vm285_vm1, %v2869_v53, %v2868_v60  ;;  %v2728_v3 = vld [vmem:[%s4754_s4 + $0x1d] sm:$0x1]  ;;  %v2729_v4 = vld [vmem:[%s4754_s4 + $0x25] sm:$0x1]  ;;  %v2730_v5 = vld [vmem:[%s4754_s4 + $0x2d] sm:$0x1] }
  0xe2   : > { %v2437_v6 = vsel %vm300_vm6, %v2436_v40, %v2435_v1  ;;  %v2872_v7 = vsel %vm288_vm2, %v2871_v55, %v2870_v2  ;;  %v2731_v8 = vld [vmem:[%s4754_s4 + $0x35] sm:$0x1]  ;;  %v2732_v9 = vld [vmem:[%s4754_s4 + $0x3d] sm:$0x1]  ;;  %v2853_v10 = vrot.slane %v2726_v63, 7  ;;  %v2855_v11 = vrot.slane %v2727_v0, 6  ;;  %v5398_v40 = vpop.trf.xlu0  ;;  %v5415_v63 = vpop.trf.xlu1 }
  0xe3   : > { %2652 = vxpose.xlu0.b32.start.end [1/1] (short) (narrow) %v2437_v6, 8  ;;  %v2874_v12 = vsel %vm291_vm3, %v2873_v56, %v2872_v7  ;;  %v2857_v13 = vrot.slane %v2728_v3, 5  ;;  %v2859_v14 = vrot.slane %v2729_v4, 4  ;;  %v2861_v15 = vrot.slane %v2730_v5, 3  ;;  %v2749_v16 = vld [vmem:[%s4754_s4 + $0xc5] sm:$0x1] }
  0xe4   : > { %v2876_v17 = vsel %vm294_vm4, %v2875_v57, %v2874_v12  ;;  %v2854_v18 = vsel %vm282_vm0, %v2853_v10, %v2725_v58  ;;  %v2863_v19 = vrot.slane %v2731_v8, 2  ;;  %v2865_v20 = vrot.slane %v2732_v9, 1  ;;  %v2750_v21 = vld [vmem:[%s4754_s4 + $0xcd] sm:$0x1]  ;;  %v2751_v22 = vld [vmem:[%s4754_s4 + $0xd5] sm:$0x1] }
  0xe5   : > { %v2878_v23 = vsel %vm297_vm5, %v2877_v61, %v2876_v17  ;;  %v2856_v24 = vsel %vm285_vm1, %v2855_v11, %v2854_v18  ;;  %v2752_v25 = vld [vmem:[%s4754_s4 + $0xdd] sm:$0x1]  ;;  %v2753_v26 = vld [vmem:[%s4754_s4 + $0xe5] sm:$0x1]  ;;  %v2754_v27 = vld [vmem:[%s4754_s4 + $0xed] sm:$0x1] }
  0xe6   : > { %v2880_v29 = vsel %vm300_vm6, %v2879_v62, %v2878_v23  ;;  %v2858_v30 = vsel %vm288_vm2, %v2857_v13, %v2856_v24  ;;  %v2755_v31 = vld [vmem:[%s4754_s4 + $0xf5] sm:$0x1]  ;;  %v2756_v32 = vld [vmem:[%s4754_s4 + $0xfd] sm:$0x1]  ;;  %v2895_v33 = vrot.slane %v2750_v21, 7  ;;  %v2897_v34 = vrot.slane %v2751_v22, 6  ;;  %v5426_v11 = vpop.trf.xlu0 }
  0xe7   : > { %3005 = vxpose.xlu1.b32.start.end [1/1] (short) (narrow) %v2880_v29, 8  ;;  %v2860_v35 = vsel %vm291_vm3, %v2859_v14, %v2858_v30  ;;  %v2899_v36 = vrot.slane %v2752_v25, 5  ;;  %v2901_v37 = vrot.slane %v2753_v26, 4  ;;  %v2903_v38 = vrot.slane %v2754_v27, 3  ;;  %v2741_v39 = vld [vmem:[%s4754_s4 + $0x85] sm:$0x1] }
  0xe8   : > { %v2862_v41 = vsel %vm294_vm4, %v2861_v15, %v2860_v35  ;;  %v2896_v42 = vsel %vm282_vm0, %v2895_v33, %v2749_v16  ;;  %v2905_v43 = vrot.slane %v2755_v31, 2  ;;  %v2907_v44 = vrot.slane %v2756_v32, 1  ;;  %v2742_v45 = vld [vmem:[%s4754_s4 + $0x8d] sm:$0x1]  ;;  %v2743_v46 = vld [vmem:[%s4754_s4 + $0x95] sm:$0x1]  ;;  %v5443_v35 = vpop.trf.xlu1 }
  0xe9   : > { %v2864_v47 = vsel %vm297_vm5, %v2863_v19, %v2862_v41  ;;  %v2898_v48 = vsel %vm285_vm1, %v2897_v34, %v2896_v42  ;;  %v2744_v49 = vld [vmem:[%s4754_s4 + $0x9d] sm:$0x1]  ;;  %v2745_v50 = vld [vmem:[%s4754_s4 + $0xa5] sm:$0x1]  ;;  %v2746_v51 = vld [vmem:[%s4754_s4 + $0xad] sm:$0x1] }
  0xea   : > { %v2866_v52 = vsel %vm300_vm6, %v2865_v20, %v2864_v47  ;;  %v2900_v53 = vsel %vm288_vm2, %v2899_v36, %v2898_v48  ;;  %v2747_v54 = vld [vmem:[%s4754_s4 + $0xb5] sm:$0x1]  ;;  %v2748_v55 = vld [vmem:[%s4754_s4 + $0xbd] sm:$0x1]  ;;  %v2881_v56 = vrot.slane %v2742_v45, 7  ;;  %v2883_v57 = vrot.slane %v2743_v46, 6  ;;  %v5451_v48 = vpop.trf.xlu0 }
  0xeb   : > { %2973 = vxpose.xlu0.b32.start.end [1/1] (short) (narrow) %v2866_v52, 8  ;;  %v2902_v58 = vsel %vm291_vm3, %v2901_v37, %v2900_v53  ;;  %v2885_v59 = vrot.slane %v2744_v49, 5  ;;  %v2887_v60 = vrot.slane %v2745_v50, 4  ;;  %v2889_v61 = vrot.slane %v2746_v51, 3  ;;  %v2765_v62 = vld [vmem:[%s4754_s4 + $0x145] sm:$0x1] }
  0xec   : > { %v2904_v0 = vsel %vm294_vm4, %v2903_v38, %v2902_v58  ;;  %v2882_v1 = vsel %vm282_vm0, %v2881_v56, %v2741_v39  ;;  %v2891_v2 = vrot.slane %v2747_v54, 2  ;;  %v2893_v3 = vrot.slane %v2748_v55, 1  ;;  %v2766_v4 = vld [vmem:[%s4754_s4 + $0x14d] sm:$0x1]  ;;  %v2767_v5 = vld [vmem:[%s4754_s4 + $0x155] sm:$0x1] }
  0xed   : > { %v2906_v6 = vsel %vm297_vm5, %v2905_v43, %v2904_v0  ;;  %v2884_v7 = vsel %vm285_vm1, %v2883_v57, %v2882_v1  ;;  %v2768_v8 = vld [vmem:[%s4754_s4 + $0x15d] sm:$0x1]  ;;  %v2769_v9 = vld [vmem:[%s4754_s4 + $0x165] sm:$0x1]  ;;  %v2770_v10 = vld [vmem:[%s4754_s4 + $0x16d] sm:$0x1] }
  0xee   : > { %v2908_v12 = vsel %vm300_vm6, %v2907_v44, %v2906_v6  ;;  %v2886_v13 = vsel %vm288_vm2, %v2885_v59, %v2884_v7  ;;  %v2771_v14 = vld [vmem:[%s4754_s4 + $0x175] sm:$0x1]  ;;  %v2772_v15 = vld [vmem:[%s4754_s4 + $0x17d] sm:$0x1]  ;;  %v2923_v16 = vrot.slane %v2766_v4, 7  ;;  %v2925_v17 = vrot.slane %v2767_v5, 6 }
  0xef   : > { %3069 = vxpose.xlu1.b32.start.end [1/1] (short) (narrow) %v2908_v12, 8  ;;  %v2888_v18 = vsel %vm291_vm3, %v2887_v60, %v2886_v13  ;;  %v2927_v19 = vrot.slane %v2768_v8, 5  ;;  %v2929_v20 = vrot.slane %v2769_v9, 4  ;;  %v2931_v21 = vrot.slane %v2770_v10, 3  ;;  %v2757_v22 = vld [vmem:[%s4754_s4 + $0x105] sm:$0x1]  ;;  %v5468_v8 = vpop.trf.xlu1 }
  0xf0   : > { %v2890_v23 = vsel %vm294_vm4, %v2889_v61, %v2888_v18  ;;  %v2924_v24 = vsel %vm282_vm0, %v2923_v16, %v2765_v62  ;;  %v2933_v25 = vrot.slane %v2771_v14, 2  ;;  %v2935_v26 = vrot.slane %v2772_v15, 1  ;;  %v2758_v27 = vld [vmem:[%s4754_s4 + $0x10d] sm:$0x1]  ;;  %v2759_v29 = vld [vmem:[%s4754_s4 + $0x115] sm:$0x1] }
  0xf1   : > { %v2892_v30 = vsel %vm297_vm5, %v2891_v2, %v2890_v23  ;;  %v2926_v31 = vsel %vm285_vm1, %v2925_v17, %v2924_v24  ;;  %v2760_v32 = vld [vmem:[%s4754_s4 + $0x11d] sm:$0x1]  ;;  %v2761_v33 = vld [vmem:[%s4754_s4 + $0x125] sm:$0x1]  ;;  %v2762_v34 = vld [vmem:[%s4754_s4 + $0x12d] sm:$0x1] }
  0xf2   : > { %v2894_v36 = vsel %vm300_vm6, %v2893_v3, %v2892_v30  ;;  %v2928_v37 = vsel %vm288_vm2, %v2927_v19, %v2926_v31  ;;  %v2763_v38 = vld [vmem:[%s4754_s4 + $0x135] sm:$0x1]  ;;  %v2764_v39 = vld [vmem:[%s4754_s4 + $0x13d] sm:$0x1]  ;;  %v2909_v41 = vrot.slane %v2758_v27, 7  ;;  %v2911_v42 = vrot.slane %v2759_v29, 6 }
  0xf3   : > { %3037 = vxpose.xlu0.b32.start.end [1/1] (short) (narrow) %v2894_v36, 8  ;;  %v2930_v43 = vsel %vm291_vm3, %v2929_v20, %v2928_v37  ;;  %v2913_v44 = vrot.slane %v2760_v32, 5  ;;  %v2915_v45 = vrot.slane %v2761_v33, 4  ;;  %v2917_v46 = vrot.slane %v2762_v34, 3  ;;  %v2781_v47 = vld [vmem:[%s4754_s4 + $0x1c5] sm:$0x1] }
  0xf4   : > { %v2932_v49 = vsel %vm294_vm4, %v2931_v21, %v2930_v43  ;;  %v2910_v50 = vsel %vm282_vm0, %v2909_v41, %v2757_v22  ;;  %v2919_v51 = vrot.slane %v2763_v38, 2  ;;  %v2921_v52 = vrot.slane %v2764_v39, 1  ;;  %v2782_v53 = vld [vmem:[%s4754_s4 + $0x1cd] sm:$0x1]  ;;  %v2783_v54 = vld [vmem:[%s4754_s4 + $0x1d5] sm:$0x1]  ;;  %v5479_v21 = vpop.trf.xlu0 }
  0xf5   : > { %v2934_v55 = vsel %vm297_vm5, %v2933_v25, %v2932_v49  ;;  %v2912_v56 = vsel %vm285_vm1, %v2911_v42, %v2910_v50  ;;  %v2784_v57 = vld [vmem:[%s4754_s4 + $0x1dd] sm:$0x1]  ;;  %v2785_v58 = vld [vmem:[%s4754_s4 + $0x1e5] sm:$0x1]  ;;  %v2786_v59 = vld [vmem:[%s4754_s4 + $0x1ed] sm:$0x1] }
  0xf6   : > { %v2936_v60 = vsel %vm300_vm6, %v2935_v26, %v2934_v55  ;;  %v2914_v61 = vsel %vm288_vm2, %v2913_v44, %v2912_v56  ;;  %v2787_v62 = vld [vmem:[%s4754_s4 + $0x1f5] sm:$0x1]  ;;  %v2788_v0 = vld [vmem:[%s4754_s4 + $0x1fd] sm:$0x1]  ;;  %v2951_v1 = vrot.slane %v2782_v53, 7  ;;  %v2953_v2 = vrot.slane %v2783_v54, 6 }
  0xf7   : > { %3133 = vxpose.xlu1.b32.start.end [1/1] (short) (narrow) %v2936_v60, 8  ;;  %v2916_v3 = vsel %vm291_vm3, %v2915_v45, %v2914_v61  ;;  %v2955_v4 = vrot.slane %v2784_v57, 5  ;;  %v2957_v5 = vrot.slane %v2785_v58, 4  ;;  %v2959_v6 = vrot.slane %v2786_v59, 3  ;;  %v2773_v7 = vld [vmem:[%s4754_s4 + $0x185] sm:$0x1] }
  0xf8   : > { %v2918_v9 = vsel %vm294_vm4, %v2917_v46, %v2916_v3  ;;  %v2952_v10 = vsel %vm282_vm0, %v2951_v1, %v2781_v47  ;;  %v2961_v12 = vrot.slane %v2787_v62, 2  ;;  %v2963_v13 = vrot.slane %v2788_v0, 1  ;;  %v2774_v14 = vld [vmem:[%s4754_s4 + $0x18d] sm:$0x1]  ;;  %v2775_v15 = vld [vmem:[%s4754_s4 + $0x195] sm:$0x1]  ;;  %v5496_v47 = vpop.trf.xlu1  ;;  %v5504_v60 = vpop.trf.xlu0 }
  0xf9   : > { %v2920_v16 = vsel %vm297_vm5, %v2919_v51, %v2918_v9  ;;  %v2954_v17 = vsel %vm285_vm1, %v2953_v2, %v2952_v10  ;;  %v2776_v18 = vld [vmem:[%s4754_s4 + $0x19d] sm:$0x1]  ;;  %v2777_v19 = vld [vmem:[%s4754_s4 + $0x1a5] sm:$0x1]  ;;  %v2778_v20 = vld [vmem:[%s4754_s4 + $0x1ad] sm:$0x1] }
  0xfa   : > { %v2922_v22 = vsel %vm300_vm6, %v2921_v52, %v2920_v16  ;;  %v2956_v23 = vsel %vm288_vm2, %v2955_v4, %v2954_v17  ;;  %v2779_v24 = vld [vmem:[%s4754_s4 + $0x1b5] sm:$0x1]  ;;  %v2780_v25 = vld [vmem:[%s4754_s4 + $0x1bd] sm:$0x1]  ;;  %v2937_v26 = vrot.slane %v2774_v14, 7  ;;  %v2939_v27 = vrot.slane %v2775_v15, 6 }
  0xfb   : > { %3101 = vxpose.xlu0.b32.start.end [1/1] (short) (narrow) %v2922_v22, 8  ;;  %v2958_v29 = vsel %vm291_vm3, %v2957_v5, %v2956_v23  ;;  %v2941_v30 = vrot.slane %v2776_v18, 5  ;;  %v2943_v31 = vrot.slane %v2777_v19, 4  ;;  %v2945_v32 = vrot.slane %v2778_v20, 3  ;;  %v3246_v33 = vld [vmem:[%s4754_s4 + $0x46] sm:$0x1] }
  0xfc   : > { %v2960_v34 = vsel %vm294_vm4, %v2959_v6, %v2958_v29  ;;  %v2938_v36 = vsel %vm282_vm0, %v2937_v26, %v2773_v7  ;;  %v2947_v37 = vrot.slane %v2779_v24, 2  ;;  %v2949_v38 = vrot.slane %v2780_v25, 1  ;;  %v3247_v39 = vld [vmem:[%s4754_s4 + $0x4e] sm:$0x1]  ;;  %v3248_v41 = vld [vmem:[%s4754_s4 + $0x56] sm:$0x1]  ;;  %v5521_v23 = vpop.trf.xlu1 }
  0xfd   : > { %v2962_v42 = vsel %vm297_vm5, %v2961_v12, %v2960_v34  ;;  %v2940_v43 = vsel %vm285_vm1, %v2939_v27, %v2938_v36  ;;  %v3249_v44 = vld [vmem:[%s4754_s4 + $0x5e] sm:$0x1]  ;;  %v3250_v45 = vld [vmem:[%s4754_s4 + $0x66] sm:$0x1]  ;;  %v3251_v46 = vld [vmem:[%s4754_s4 + $0x6e] sm:$0x1] }
  0xfe   : > { %v2964_v49 = vsel %vm300_vm6, %v2963_v13, %v2962_v42  ;;  %v2942_v50 = vsel %vm288_vm2, %v2941_v30, %v2940_v43  ;;  %v3252_v51 = vld [vmem:[%s4754_s4 + $0x76] sm:$0x1]  ;;  %v3253_v52 = vld [vmem:[%s4754_s4 + $0x7e] sm:$0x1]  ;;  %v3380_v53 = vrot.slane %v3247_v39, 7  ;;  %v3382_v54 = vrot.slane %v3248_v41, 6 }
  0xff   : > { %3197 = vxpose.xlu1.b32.start.end [1/1] (short) (narrow) %v2964_v49, 8  ;;  %v2944_v55 = vsel %vm291_vm3, %v2943_v31, %v2942_v50  ;;  %v3384_v56 = vrot.slane %v3249_v44, 5  ;;  %v3386_v57 = vrot.slane %v3250_v45, 4  ;;  %v3388_v58 = vrot.slane %v3251_v46, 3  ;;  %v3238_v59 = vld [vmem:[%s4754_s4 + $0x6] sm:$0x1] }
 0x100   : > { %v2946_v61 = vsel %vm294_vm4, %v2945_v32, %v2944_v55  ;;  %v3381_v62 = vsel %vm282_vm0, %v3380_v53, %v3246_v33  ;;  %v3390_v0 = vrot.slane %v3252_v51, 2  ;;  %v3392_v1 = vrot.slane %v3253_v52, 1  ;;  %v3239_v2 = vld [vmem:[%s4754_s4 + $0xe] sm:$0x1]  ;;  %v3240_v3 = vld [vmem:[%s4754_s4 + $0x16] sm:$0x1] }
 0x101   : > { %v2948_v4 = vsel %vm297_vm5, %v2947_v37, %v2946_v61  ;;  %v3383_v5 = vsel %vm285_vm1, %v3382_v54, %v3381_v62  ;;  %v3241_v6 = vld [vmem:[%s4754_s4 + $0x1e] sm:$0x1]  ;;  %v3242_v7 = vld [vmem:[%s4754_s4 + $0x26] sm:$0x1]  ;;  %v3243_v9 = vld [vmem:[%s4754_s4 + $0x2e] sm:$0x1]  ;;  %v5532_v37 = vpop.trf.xlu0 }
 0x102   : > { %v2950_v10 = vsel %vm300_vm6, %v2949_v38, %v2948_v4  ;;  %v3385_v12 = vsel %vm288_vm2, %v3384_v56, %v3383_v5  ;;  %v3244_v13 = vld [vmem:[%s4754_s4 + $0x36] sm:$0x1]  ;;  %v3245_v14 = vld [vmem:[%s4754_s4 + $0x3e] sm:$0x1]  ;;  %v3366_v15 = vrot.slane %v3239_v2, 7  ;;  %v3368_v16 = vrot.slane %v3240_v3, 6 }
 0x103   : > { %3165 = vxpose.xlu0.b32.start.end [1/1] (short) (narrow) %v2950_v10, 8  ;;  %v3387_v17 = vsel %vm291_vm3, %v3386_v57, %v3385_v12  ;;  %v3370_v18 = vrot.slane %v3241_v6, 5  ;;  %v3372_v19 = vrot.slane %v3242_v7, 4  ;;  %v3374_v20 = vrot.slane %v3243_v9, 3  ;;  %v3262_v22 = vld [vmem:[%s4754_s4 + $0xc6] sm:$0x1] }
 0x104   : > { %v3389_v24 = vsel %vm294_vm4, %v3388_v58, %v3387_v17  ;;  %v3367_v25 = vsel %vm282_vm0, %v3366_v15, %v3238_v59  ;;  %v3376_v26 = vrot.slane %v3244_v13, 2  ;;  %v3378_v27 = vrot.slane %v3245_v14, 1  ;;  %v3263_v29 = vld [vmem:[%s4754_s4 + $0xce] sm:$0x1]  ;;  %v3264_v30 = vld [vmem:[%s4754_s4 + $0xd6] sm:$0x1] }
 0x105   : > { %v3391_v31 = vsel %vm297_vm5, %v3390_v0, %v3389_v24  ;;  %v3369_v32 = vsel %vm285_vm1, %v3368_v16, %v3367_v25  ;;  %v3265_v33 = vld [vmem:[%s4754_s4 + $0xde] sm:$0x1]  ;;  %v3266_v34 = vld [vmem:[%s4754_s4 + $0xe6] sm:$0x1]  ;;  %v3267_v36 = vld [vmem:[%s4754_s4 + $0xee] sm:$0x1]  ;;  %v5557_v15 = vpop.trf.xlu0 }
 0x106   : > { %v3393_v38 = vsel %vm300_vm6, %v3392_v1, %v3391_v31  ;;  %v3371_v39 = vsel %vm288_vm2, %v3370_v18, %v3369_v32  ;;  %v3268_v41 = vld [vmem:[%s4754_s4 + $0xf6] sm:$0x1]  ;;  %v3269_v42 = vld [vmem:[%s4754_s4 + $0xfe] sm:$0x1]  ;;  %v3408_v43 = vrot.slane %v3263_v29, 7  ;;  %v3410_v44 = vrot.slane %v3264_v30, 6  ;;  %v5549_v1 = vpop.trf.xlu1 }
 0x107   : > { %3518 = vxpose.xlu1.b32.start.end [1/1] (short) (narrow) %v3393_v38, 8  ;;  %v3373_v45 = vsel %vm291_vm3, %v3372_v19, %v3371_v39  ;;  %v3412_v46 = vrot.slane %v3265_v33, 5  ;;  %v3414_v49 = vrot.slane %v3266_v34, 4  ;;  %v3416_v50 = vrot.slane %v3267_v36, 3  ;;  %v3254_v51 = vld [vmem:[%s4754_s4 + $0x86] sm:$0x1] }
 0x108   : > { %v3375_v52 = vsel %vm294_vm4, %v3374_v20, %v3373_v45  ;;  %v3409_v53 = vsel %vm282_vm0, %v3408_v43, %v3262_v22  ;;  %v3418_v54 = vrot.slane %v3268_v41, 2  ;;  %v3420_v55 = vrot.slane %v3269_v42, 1  ;;  %v3255_v56 = vld [vmem:[%s4754_s4 + $0x8e] sm:$0x1]  ;;  %v3256_v57 = vld [vmem:[%s4754_s4 + $0x96] sm:$0x1] }
 0x109   : > { %v3377_v58 = vsel %vm297_vm5, %v3376_v26, %v3375_v52  ;;  %v3411_v59 = vsel %vm285_vm1, %v3410_v44, %v3409_v53  ;;  %v3257_v61 = vld [vmem:[%s4754_s4 + $0x9e] sm:$0x1]  ;;  %v3258_v62 = vld [vmem:[%s4754_s4 + $0xa6] sm:$0x1]  ;;  %v3259_v0 = vld [vmem:[%s4754_s4 + $0xae] sm:$0x1] }
 0x10a   : > { %v3379_v2 = vsel %vm300_vm6, %v3378_v27, %v3377_v58  ;;  %v3413_v3 = vsel %vm288_vm2, %v3412_v46, %v3411_v59  ;;  %v3260_v4 = vld [vmem:[%s4754_s4 + $0xb6] sm:$0x1]  ;;  %v3261_v5 = vld [vmem:[%s4754_s4 + $0xbe] sm:$0x1]  ;;  %v3394_v6 = vrot.slane %v3255_v56, 7  ;;  %v3396_v7 = vrot.slane %v3256_v57, 6  ;;  %v5574_v44 = vpop.trf.xlu1  ;;  %v5585_v58 = vpop.trf.xlu0 }
 0x10b   : > { %3486 = vxpose.xlu0.b32.start.end [1/1] (short) (narrow) %v3379_v2, 8  ;;  %v3415_v9 = vsel %vm291_vm3, %v3414_v49, %v3413_v3  ;;  %v3398_v10 = vrot.slane %v3257_v61, 5  ;;  %v3400_v12 = vrot.slane %v3258_v62, 4  ;;  %v3402_v13 = vrot.slane %v3259_v0, 3  ;;  %v3278_v14 = vld [vmem:[%s4754_s4 + $0x146] sm:$0x1] }
 0x10c   : > { %v3417_v16 = vsel %vm294_vm4, %v3416_v50, %v3415_v9  ;;  %v3395_v17 = vsel %vm282_vm0, %v3394_v6, %v3254_v51  ;;  %v3404_v18 = vrot.slane %v3260_v4, 2  ;;  %v3406_v19 = vrot.slane %v3261_v5, 1  ;;  %v3279_v20 = vld [vmem:[%s4754_s4 + $0x14e] sm:$0x1]  ;;  %v3280_v22 = vld [vmem:[%s4754_s4 + $0x156] sm:$0x1] }
 0x10d   : > { %v3419_v24 = vsel %vm297_vm5, %v3418_v54, %v3417_v16  ;;  %v3397_v25 = vsel %vm285_vm1, %v3396_v7, %v3395_v17  ;;  %v3281_v26 = vld [vmem:[%s4754_s4 + $0x15e] sm:$0x1]  ;;  %v3282_v27 = vld [vmem:[%s4754_s4 + $0x166] sm:$0x1]  ;;  %v3283_v29 = vld [vmem:[%s4754_s4 + $0x16e] sm:$0x1] }
 0x10e   : > { %v3421_v30 = vsel %vm300_vm6, %v3420_v55, %v3419_v24  ;;  %v3399_v31 = vsel %vm288_vm2, %v3398_v10, %v3397_v25  ;;  %v3284_v32 = vld [vmem:[%s4754_s4 + $0x176] sm:$0x1]  ;;  %v3285_v33 = vld [vmem:[%s4754_s4 + $0x17e] sm:$0x1]  ;;  %v3436_v34 = vrot.slane %v3279_v20, 7  ;;  %v3438_v36 = vrot.slane %v3280_v22, 6  ;;  %v5602_v25 = vpop.trf.xlu1 }
 0x10f   : > { %3582 = vxpose.xlu1.b32.start.end [1/1] (short) (narrow) %v3421_v30, 8  ;;  %v3401_v38 = vsel %vm291_vm3, %v3400_v12, %v3399_v31  ;;  %v3440_v39 = vrot.slane %v3281_v26, 5  ;;  %v3442_v41 = vrot.slane %v3282_v27, 4  ;;  %v3444_v42 = vrot.slane %v3283_v29, 3  ;;  %v3270_v43 = vld [vmem:[%s4754_s4 + $0x106] sm:$0x1] }
 0x110   : > { %v3403_v45 = vsel %vm294_vm4, %v3402_v13, %v3401_v38  ;;  %v3437_v46 = vsel %vm282_vm0, %v3436_v34, %v3278_v14  ;;  %v3446_v49 = vrot.slane %v3284_v32, 2  ;;  %v3448_v50 = vrot.slane %v3285_v33, 1  ;;  %v3271_v51 = vld [vmem:[%s4754_s4 + $0x10e] sm:$0x1]  ;;  %v3272_v52 = vld [vmem:[%s4754_s4 + $0x116] sm:$0x1] }
 0x111   : > { %v3405_v53 = vsel %vm297_vm5, %v3404_v18, %v3403_v45  ;;  %v3439_v54 = vsel %vm285_vm1, %v3438_v36, %v3437_v46  ;;  %v3273_v55 = vld [vmem:[%s4754_s4 + $0x11e] sm:$0x1]  ;;  %v3274_v56 = vld [vmem:[%s4754_s4 + $0x126] sm:$0x1]  ;;  %v3275_v57 = vld [vmem:[%s4754_s4 + $0x12e] sm:$0x1] }
 0x112   : > { %v3407_v59 = vsel %vm300_vm6, %v3406_v19, %v3405_v53  ;;  %v3441_v61 = vsel %vm288_vm2, %v3440_v39, %v3439_v54  ;;  %v3276_v62 = vld [vmem:[%s4754_s4 + $0x136] sm:$0x1]  ;;  %v3277_v0 = vld [vmem:[%s4754_s4 + $0x13e] sm:$0x1]  ;;  %v3422_v2 = vrot.slane %v3271_v51, 7  ;;  %v3424_v3 = vrot.slane %v3272_v52, 6 }
 0x113   : > { %3550 = vxpose.xlu0.b32.start.end [1/1] (short) (narrow) %v3407_v59, 8  ;;  %v3443_v4 = vsel %vm291_vm3, %v3442_v41, %v3441_v61  ;;  %v3426_v5 = vrot.slane %v3273_v55, 5  ;;  %v3428_v6 = vrot.slane %v3274_v56, 4  ;;  %v3430_v7 = vrot.slane %v3275_v57, 3  ;;  %v3294_v9 = vld [vmem:[%s4754_s4 + $0x1c6] sm:$0x1]  ;;  %v5610_v41 = vpop.trf.xlu0 }
 0x114   : > { %v3445_v10 = vsel %vm294_vm4, %v3444_v42, %v3443_v4  ;;  %v3423_v12 = vsel %vm282_vm0, %v3422_v2, %v3270_v43  ;;  %v3432_v13 = vrot.slane %v3276_v62, 2  ;;  %v3434_v14 = vrot.slane %v3277_v0, 1  ;;  %v3295_v16 = vld [vmem:[%s4754_s4 + $0x1ce] sm:$0x1]  ;;  %v3296_v17 = vld [vmem:[%s4754_s4 + $0x1d6] sm:$0x1] }
 0x115   : > { %v3447_v18 = vsel %vm297_vm5, %v3446_v49, %v3445_v10  ;;  %v3425_v19 = vsel %vm285_vm1, %v3424_v3, %v3423_v12  ;;  %v3297_v20 = vld [vmem:[%s4754_s4 + $0x1de] sm:$0x1]  ;;  %v3298_v22 = vld [vmem:[%s4754_s4 + $0x1e6] sm:$0x1]  ;;  %v3299_v24 = vld [vmem:[%s4754_s4 + $0x1ee] sm:$0x1] }
 0x116   : > { %v3449_v26 = vsel %vm300_vm6, %v3448_v50, %v3447_v18  ;;  %v3427_v27 = vsel %vm288_vm2, %v3426_v5, %v3425_v19  ;;  %v3300_v29 = vld [vmem:[%s4754_s4 + $0x1f6] sm:$0x1]  ;;  %v3301_v30 = vld [vmem:[%s4754_s4 + $0x1fe] sm:$0x1]  ;;  %v3464_v31 = vrot.slane %v3295_v16, 7  ;;  %v3466_v32 = vrot.slane %v3296_v17, 6 }
 0x117   : > { %3646 = vxpose.xlu1.b32.start.end [1/1] (short) (narrow) %v3449_v26, 8  ;;  %v3429_v33 = vsel %vm291_vm3, %v3428_v6, %v3427_v27  ;;  %v3468_v34 = vrot.slane %v3297_v20, 5  ;;  %v3470_v36 = vrot.slane %v3298_v22, 4  ;;  %v3472_v38 = vrot.slane %v3299_v24, 3  ;;  %v3286_v39 = vld [vmem:[%s4754_s4 + $0x186] sm:$0x1]  ;;  %v5638_v24 = vpop.trf.xlu0 }
 0x118   : > { %v3431_v42 = vsel %vm294_vm4, %v3430_v7, %v3429_v33  ;;  %v3465_v43 = vsel %vm282_vm0, %v3464_v31, %v3294_v9  ;;  %v3474_v45 = vrot.slane %v3300_v29, 2  ;;  %v3476_v46 = vrot.slane %v3301_v30, 1  ;;  %v3287_v49 = vld [vmem:[%s4754_s4 + $0x18e] sm:$0x1]  ;;  %v3288_v50 = vld [vmem:[%s4754_s4 + $0x196] sm:$0x1]  ;;  %v5627_v7 = vpop.trf.xlu1 }
 0x119   : > { %v3433_v51 = vsel %vm297_vm5, %v3432_v13, %v3431_v42  ;;  %v3467_v52 = vsel %vm285_vm1, %v3466_v32, %v3465_v43  ;;  %v3289_v53 = vld [vmem:[%s4754_s4 + $0x19e] sm:$0x1]  ;;  %v3290_v54 = vld [vmem:[%s4754_s4 + $0x1a6] sm:$0x1]  ;;  %v3291_v55 = vld [vmem:[%s4754_s4 + $0x1ae] sm:$0x1] }
 0x11a   : > { %v3435_v56 = vsel %vm300_vm6, %v3434_v14, %v3433_v51  ;;  %v3469_v57 = vsel %vm288_vm2, %v3468_v34, %v3467_v52  ;;  %v3292_v59 = vld [vmem:[%s4754_s4 + $0x1b6] sm:$0x1]  ;;  %v3293_v61 = vld [vmem:[%s4754_s4 + $0x1be] sm:$0x1]  ;;  %v3450_v62 = vrot.slane %v3287_v49, 7  ;;  %v3452_v0 = vrot.slane %v3288_v50, 6 }
 0x11b   : > { %3614 = vxpose.xlu0.b32.start.end [1/1] (short) (narrow) %v3435_v56, 8  ;;  %v3471_v2 = vsel %vm291_vm3, %v3470_v36, %v3469_v57  ;;  %v3454_v3 = vrot.slane %v3289_v53, 5  ;;  %v3456_v4 = vrot.slane %v3290_v54, 4  ;;  %v3458_v5 = vrot.slane %v3291_v55, 3  ;;  %v3759_v6 = vld [vmem:[%s4754_s4 + $0x47] sm:$0x1] }
 0x11c   : > { %v3473_v9 = vsel %vm294_vm4, %v3472_v38, %v3471_v2  ;;  %v3451_v10 = vsel %vm282_vm0, %v3450_v62, %v3286_v39  ;;  %v3460_v12 = vrot.slane %v3292_v59, 2  ;;  %v3462_v13 = vrot.slane %v3293_v61, 1  ;;  %v3760_v14 = vld [vmem:[%s4754_s4 + $0x4f] sm:$0x1]  ;;  %v3761_v16 = vld [vmem:[%s4754_s4 + $0x57] sm:$0x1]  ;;  %v5655_v56 = vpop.trf.xlu1 }
 0x11d   : > { %v3475_v17 = vsel %vm297_vm5, %v3474_v45, %v3473_v9  ;;  %v3453_v18 = vsel %vm285_vm1, %v3452_v0, %v3451_v10  ;;  %v3762_v19 = vld [vmem:[%s4754_s4 + $0x5f] sm:$0x1]  ;;  %v3763_v20 = vld [vmem:[%s4754_s4 + $0x67] sm:$0x1]  ;;  %v3764_v22 = vld [vmem:[%s4754_s4 + $0x6f] sm:$0x1]  ;;  %v5663_v10 = vpop.trf.xlu0 }
 0x11e   : > { %v3477_v26 = vsel %vm300_vm6, %v3476_v46, %v3475_v17  ;;  %v3455_v27 = vsel %vm288_vm2, %v3454_v3, %v3453_v18  ;;  %v3765_v29 = vld [vmem:[%s4754_s4 + $0x77] sm:$0x1]  ;;  %v3766_v30 = vld [vmem:[%s4754_s4 + $0x7f] sm:$0x1]  ;;  %v3893_v31 = vrot.slane %v3760_v14, 7  ;;  %v3895_v32 = vrot.slane %v3761_v16, 6 }
 0x11f   : > { %3710 = vxpose.xlu1.b32.start.end [1/1] (short) (narrow) %v3477_v26, 8  ;;  %v3457_v33 = vsel %vm291_vm3, %v3456_v4, %v3455_v27  ;;  %v3897_v34 = vrot.slane %v3762_v19, 5  ;;  %v3899_v36 = vrot.slane %v3763_v20, 4  ;;  %v3901_v38 = vrot.slane %v3764_v22, 3  ;;  %v3751_v39 = vld [vmem:[%s4754_s4 + $0x7] sm:$0x1] }
 0x120   : > { %v3459_v42 = vsel %vm294_vm4, %v3458_v5, %v3457_v33  ;;  %v3894_v43 = vsel %vm282_vm0, %v3893_v31, %v3759_v6  ;;  %v3903_v45 = vrot.slane %v3765_v29, 2  ;;  %v3905_v46 = vrot.slane %v3766_v30, 1  ;;  %v3752_v49 = vld [vmem:[%s4754_s4 + $0xf] sm:$0x1]  ;;  %v3753_v50 = vld [vmem:[%s4754_s4 + $0x17] sm:$0x1] }
 0x121   : > { %v3461_v51 = vsel %vm297_vm5, %v3460_v12, %v3459_v42  ;;  %v3896_v52 = vsel %vm285_vm1, %v3895_v32, %v3894_v43  ;;  %v3754_v53 = vld [vmem:[%s4754_s4 + $0x1f] sm:$0x1]  ;;  %v3755_v54 = vld [vmem:[%s4754_s4 + $0x27] sm:$0x1]  ;;  %v3756_v55 = vld [vmem:[%s4754_s4 + $0x2f] sm:$0x1] }
 0x122   : > { %v3463_v57 = vsel %vm300_vm6, %v3462_v13, %v3461_v51  ;;  %v3898_v59 = vsel %vm288_vm2, %v3897_v34, %v3896_v52  ;;  %v3757_v61 = vld [vmem:[%s4754_s4 + $0x37] sm:$0x1]  ;;  %v3758_v62 = vld [vmem:[%s4754_s4 + $0x3f] sm:$0x1]  ;;  %v3879_v0 = vrot.slane %v3752_v49, 7  ;;  %v3881_v2 = vrot.slane %v3753_v50, 6 }
 0x123   : > { %3678 = vxpose.xlu0.b32.start.end [1/1] (short) (narrow) %v3463_v57, 8  ;;  %v3900_v3 = vsel %vm291_vm3, %v3899_v36, %v3898_v59  ;;  %v3883_v4 = vrot.slane %v3754_v53, 5  ;;  %v3885_v5 = vrot.slane %v3755_v54, 4  ;;  %v3887_v6 = vrot.slane %v3756_v55, 3  ;;  %v3775_v9 = vld [vmem:[%s4754_s4 + $0xc7] sm:$0x1] }
 0x124   : > { %v3902_v12 = vsel %vm294_vm4, %v3901_v38, %v3900_v3  ;;  %v3880_v13 = vsel %vm282_vm0, %v3879_v0, %v3751_v39  ;;  %v3889_v14 = vrot.slane %v3757_v61, 2  ;;  %v3891_v16 = vrot.slane %v3758_v62, 1  ;;  %v3776_v17 = vld [vmem:[%s4754_s4 + $0xcf] sm:$0x1]  ;;  %v3777_v18 = vld [vmem:[%s4754_s4 + $0xd7] sm:$0x1]  ;;  %v5691_v62 = vpop.trf.xlu0 }
 0x125   : > { %v3904_v19 = vsel %vm297_vm5, %v3903_v45, %v3902_v12  ;;  %v3882_v20 = vsel %vm285_vm1, %v3881_v2, %v3880_v13  ;;  %v3778_v22 = vld [vmem:[%s4754_s4 + $0xdf] sm:$0x1]  ;;  %v3779_v26 = vld [vmem:[%s4754_s4 + $0xe7] sm:$0x1]  ;;  %v3780_v27 = vld [vmem:[%s4754_s4 + $0xef] sm:$0x1]  ;;  %v5680_v45 = vpop.trf.xlu1 }
 0x126   : > { %v3906_v29 = vsel %vm300_vm6, %v3905_v46, %v3904_v19  ;;  %v3884_v30 = vsel %vm288_vm2, %v3883_v4, %v3882_v20  ;;  %v3781_v31 = vld [vmem:[%s4754_s4 + $0xf7] sm:$0x1]  ;;  %v3782_v32 = vld [vmem:[%s4754_s4 + $0xff] sm:$0x1]  ;;  %v3921_v33 = vrot.slane %v3776_v17, 7  ;;  %v3923_v34 = vrot.slane %v3777_v18, 6 }
 0x127   : > { %4031 = vxpose.xlu1.b32.start.end [1/1] (short) (narrow) %v3906_v29, 8  ;;  %v3886_v36 = vsel %vm291_vm3, %v3885_v5, %v3884_v30  ;;  %v3925_v38 = vrot.slane %v3778_v22, 5  ;;  %v3927_v39 = vrot.slane %v3779_v26, 4  ;;  %v3929_v42 = vrot.slane %v3780_v27, 3  ;;  %v3767_v43 = vld [vmem:[%s4754_s4 + $0x87] sm:$0x1] }
 0x128   : > { %v3888_v46 = vsel %vm294_vm4, %v3887_v6, %v3886_v36  ;;  %v3922_v49 = vsel %vm282_vm0, %v3921_v33, %v3775_v9  ;;  %v3931_v50 = vrot.slane %v3781_v31, 2  ;;  %v3933_v51 = vrot.slane %v3782_v32, 1  ;;  %v3768_v52 = vld [vmem:[%s4754_s4 + $0x8f] sm:$0x1]  ;;  %v3769_v53 = vld [vmem:[%s4754_s4 + $0x97] sm:$0x1] }
 0x129   : > { %v3890_v54 = vsel %vm297_vm5, %v3889_v14, %v3888_v46  ;;  %v3924_v55 = vsel %vm285_vm1, %v3923_v34, %v3922_v49  ;;  %v3770_v57 = vld [vmem:[%s4754_s4 + $0x9f] sm:$0x1]  ;;  %v3771_v59 = vld [vmem:[%s4754_s4 + $0xa7] sm:$0x1]  ;;  %v3772_v61 = vld [vmem:[%s4754_s4 + $0xaf] sm:$0x1]  ;;  %v5708_v33 = vpop.trf.xlu1 }
 0x12a   : > { %v3892_v0 = vsel %vm300_vm6, %v3891_v16, %v3890_v54  ;;  %v3926_v2 = vsel %vm288_vm2, %v3925_v38, %v3924_v55  ;;  %v3773_v3 = vld [vmem:[%s4754_s4 + $0xb7] sm:$0x1]  ;;  %v3774_v4 = vld [vmem:[%s4754_s4 + $0xbf] sm:$0x1]  ;;  %v3907_v5 = vrot.slane %v3768_v52, 7  ;;  %v3909_v6 = vrot.slane %v3769_v53, 6 }
 0x12b   : > { %3999 = vxpose.xlu0.b32.start.end [1/1] (short) (narrow) %v3892_v0, 8  ;;  %v3928_v9 = vsel %vm291_vm3, %v3927_v39, %v3926_v2  ;;  %v3911_v12 = vrot.slane %v3770_v57, 5  ;;  %v3913_v13 = vrot.slane %v3771_v59, 4  ;;  %v3915_v14 = vrot.slane %v3772_v61, 3  ;;  %v3791_v17 = vld [vmem:[%s4754_s4 + $0x147] sm:$0x1] }
 0x12c   : > { %v3930_v16 = vsel %vm294_vm4, %v3929_v42, %v3928_v9  ;;  %v3908_v18 = vsel %vm282_vm0, %v3907_v5, %v3767_v43  ;;  %v3917_v19 = vrot.slane %v3773_v3, 2  ;;  %v3919_v20 = vrot.slane %v3774_v4, 1  ;;  %v3792_v22 = vld [vmem:[%s4754_s4 + $0x14f] sm:$0x1]  ;;  %v3793_v26 = vld [vmem:[%s4754_s4 + $0x157] sm:$0x1] }
 0x12d   : > { %v3932_v27 = vsel %vm297_vm5, %v3931_v50, %v3930_v16  ;;  %v3910_v29 = vsel %vm285_vm1, %v3909_v6, %v3908_v18  ;;  %v3794_v30 = vld [vmem:[%s4754_s4 + $0x15f] sm:$0x1]  ;;  %v3795_v31 = vld [vmem:[%s4754_s4 + $0x167] sm:$0x1]  ;;  %v3796_v32 = vld [vmem:[%s4754_s4 + $0x16f] sm:$0x1] }
 0x12e   : > { %v3934_v34 = vsel %vm300_vm6, %v3933_v51, %v3932_v27  ;;  %v3912_v36 = vsel %vm288_vm2, %v3911_v12, %v3910_v29  ;;  %v3797_v38 = vld [vmem:[%s4754_s4 + $0x177] sm:$0x1]  ;;  %v3798_v39 = vld [vmem:[%s4754_s4 + $0x17f] sm:$0x1]  ;;  %v3949_v42 = vrot.slane %v3792_v22, 7  ;;  %v3951_v43 = vrot.slane %v3793_v26, 6  ;;  %v5716_v51 = vpop.trf.xlu0 }
 0x12f   : > { %4095 = vxpose.xlu1.b32.start.end [1/1] (short) (narrow) %v3934_v34, 8  ;;  %v3914_v46 = vsel %vm291_vm3, %v3913_v13, %v3912_v36  ;;  %v3953_v49 = vrot.slane %v3794_v30, 5  ;;  %v3955_v50 = vrot.slane %v3795_v31, 4  ;;  %v3957_v52 = vrot.slane %v3796_v32, 3  ;;  %v3783_v53 = vld [vmem:[%s4754_s4 + $0x107] sm:$0x1] }
 0x130   : > { %v3916_v54 = vsel %vm294_vm4, %v3915_v14, %v3914_v46  ;;  %v3950_v55 = vsel %vm282_vm0, %v3949_v42, %v3791_v17  ;;  %v3959_v57 = vrot.slane %v3797_v38, 2  ;;  %v3961_v59 = vrot.slane %v3798_v39, 1  ;;  %v3784_v61 = vld [vmem:[%s4754_s4 + $0x10f] sm:$0x1]  ;;  %v3785_v0 = vld [vmem:[%s4754_s4 + $0x117] sm:$0x1] }
 0x131   : > { %v3918_v2 = vsel %vm297_vm5, %v3917_v19, %v3916_v54  ;;  %v3952_v3 = vsel %vm285_vm1, %v3951_v43, %v3950_v55  ;;  %v3786_v4 = vld [vmem:[%s4754_s4 + $0x11f] sm:$0x1]  ;;  %v3787_v5 = vld [vmem:[%s4754_s4 + $0x127] sm:$0x1]  ;;  %v3788_v6 = vld [vmem:[%s4754_s4 + $0x12f] sm:$0x1] }
 0x132   : > { %v3920_v9 = vsel %vm300_vm6, %v3919_v20, %v3918_v2  ;;  %v3954_v12 = vsel %vm288_vm2, %v3953_v49, %v3952_v3  ;;  %v3789_v13 = vld [vmem:[%s4754_s4 + $0x137] sm:$0x1]  ;;  %v3790_v14 = vld [vmem:[%s4754_s4 + $0x13f] sm:$0x1]  ;;  %v3935_v17 = vrot.slane %v3784_v61, 7  ;;  %v3937_v16 = vrot.slane %v3785_v0, 6  ;;  %v5733_v20 = vpop.trf.xlu1 }
 0x133   : > { %4063 = vxpose.xlu0.b32.start.end [1/1] (short) (narrow) %v3920_v9, 8  ;;  %v3956_v18 = vsel %vm291_vm3, %v3955_v50, %v3954_v12  ;;  %v3939_v19 = vrot.slane %v3786_v4, 5  ;;  %v3941_v22 = vrot.slane %v3787_v5, 4  ;;  %v3943_v26 = vrot.slane %v3788_v6, 3  ;;  %v3807_v27 = vld [vmem:[%s4754_s4 + $0x1c7] sm:$0x1]  ;;  %v5744_v49 = vpop.trf.xlu0 }
 0x134   : > { %v3958_v29 = vsel %vm294_vm4, %v3957_v52, %v3956_v18  ;;  %v3936_v30 = vsel %vm282_vm0, %v3935_v17, %v3783_v53  ;;  %v3945_v31 = vrot.slane %v3789_v13, 2  ;;  %v3947_v32 = vrot.slane %v3790_v14, 1  ;;  %v3808_v34 = vld [vmem:[%s4754_s4 + $0x1cf] sm:$0x1]  ;;  %v3809_v36 = vld [vmem:[%s4754_s4 + $0x1d7] sm:$0x1] }
 0x135   : > { %v3960_v38 = vsel %vm297_vm5, %v3959_v57, %v3958_v29  ;;  %v3938_v39 = vsel %vm285_vm1, %v3937_v16, %v3936_v30  ;;  %v3810_v42 = vld [vmem:[%s4754_s4 + $0x1df] sm:$0x1]  ;;  %v3811_v43 = vld [vmem:[%s4754_s4 + $0x1e7] sm:$0x1]  ;;  %v3812_v46 = vld [vmem:[%s4754_s4 + $0x1ef] sm:$0x1] }
 0x136   : > { %v3962_v50 = vsel %vm300_vm6, %v3961_v59, %v3960_v38  ;;  %v3940_v52 = vsel %vm288_vm2, %v3939_v19, %v3938_v39  ;;  %v3813_v53 = vld [vmem:[%s4754_s4 + $0x1f7] sm:$0x1]  ;;  %v3814_v54 = vld [vmem:[%s4754_s4 + $0x1ff] sm:$0x1]  ;;  %v3977_v55 = vrot.slane %v3808_v34, 7  ;;  %v3979_v61 = vrot.slane %v3809_v36, 6 }
 0x137   : > { %4159 = vxpose.xlu1.b32.start.end [1/1] (short) (narrow) %v3962_v50, 8  ;;  %v3942_v57 = vsel %vm291_vm3, %v3941_v22, %v3940_v52  ;;  %v3981_v0 = vrot.slane %v3810_v42, 5  ;;  %v3983_v2 = vrot.slane %v3811_v43, 4  ;;  %v3985_v3 = vrot.slane %v3812_v46, 3  ;;  %v3799_v4 = vld [vmem:[%s4754_s4 + $0x187] sm:$0x1]  ;;  %v2123_v22 = vpop.trf.xlu1 }
 0x138   : > { %v3944_v59 = vsel %vm294_vm4, %v3943_v26, %v3942_v57  ;;  %v3978_v5 = vsel %vm282_vm0, %v3977_v55, %v3807_v27  ;;  %v3987_v6 = vrot.slane %v3813_v53, 2  ;;  %v3989_v9 = vrot.slane %v3814_v54, 1  ;;  %v3800_v12 = vld [vmem:[%s4754_s4 + $0x18f] sm:$0x1]  ;;  %v3801_v13 = vld [vmem:[%s4754_s4 + $0x197] sm:$0x1] }
 0x139   : > { %v3946_v14 = vsel %vm297_vm5, %v3945_v31, %v3944_v59  ;;  %v3980_v17 = vsel %vm285_vm1, %v3979_v61, %v3978_v5  ;;  %v3802_v16 = vld [vmem:[%s4754_s4 + $0x19f] sm:$0x1]  ;;  %v3803_v18 = vld [vmem:[%s4754_s4 + $0x1a7] sm:$0x1]  ;;  %v3804_v19 = vld [vmem:[%s4754_s4 + $0x1af] sm:$0x1] }
 0x13a   : > { %v3948_v29 = vsel %vm300_vm6, %v3947_v32, %v3946_v14  ;;  %v3982_v30 = vsel %vm288_vm2, %v3981_v0, %v3980_v17  ;;  %v3805_v26 = vld [vmem:[%s4754_s4 + $0x1b7] sm:$0x1]  ;;  %v3963_v34 = vrot.slane %v3800_v12, 7  ;;  %v3965_v27 = vrot.slane %v3801_v13, 6  ;;  %v3806_v38 = vld [vmem:[%s4754_s4 + $0x1bf] sm:$0x1] }
 0x13b   : > { %4127 = vxpose.xlu0.b32.start.end [1/1] (short) (narrow) %v3948_v29, 8  ;;  %v3984_v36 = vsel %vm291_vm3, %v3983_v2, %v3982_v30  ;;  %v3967_v39 = vrot.slane %v3802_v16, 5  ;;  %v3969_v31 = vrot.slane %v3803_v18, 4  ;;  %v2091_v42 = vpop.trf.xlu0  ;;  %v3971_v50 = vrot.slane %v3804_v19, 3  ;;  %667 = vst.msk [vmem:[%s5774_s18 + $0x10] sm:$0xff] %vm664_vm7, %v5390_v28  ;;  %665 = vst.msk [vmem:[%s5774_s18] sm:$0xff] %vm664_vm7, %v5398_v40 }
 0x13c   : > { %v3986_v43 = vsel %vm294_vm4, %v3985_v3, %v3984_v36  ;;  %v3964_v46 = vsel %vm282_vm0, %v3963_v34, %v3799_v4  ;;  %v3973_v53 = vrot.slane %v3805_v26, 2  ;;  %v3975_v61 = vrot.slane %v3806_v38, 1  ;;  %668 = vst.msk [vmem:[%s5774_s18 + $0x18] sm:$0xff] %vm664_vm7, %v5415_v63  ;;  %666 = vst.msk [vmem:[%s5774_s18 + $0x8] sm:$0xff] %vm664_vm7, %v5426_v11  ;;  %p6000_p9 = scmp.ne.s32.totalorder %s5996_s19, 0  ;;  %s4624_s9 = smov [#allocation5]  }
 0x13d   : > { %v3988_v32 = vsel %vm297_vm5, %v3987_v6, %v3986_v43  ;;  %v3966_v52 = vsel %vm285_vm1, %v3965_v27, %v3964_v46  ;;  %670 = vst.msk [vmem:[%s5774_s18 + $0x28] sm:$0xff] %vm664_vm7, %v5443_v35  ;;  %669 = vst.msk [vmem:[%s5774_s18 + $0x20] sm:$0xff] %vm664_vm7, %v5451_v48  ;;  %s4541_s15 = sshll.u32 %s4624_s9, 4  ;;  %s4542_s15 = int_to_ptr.vmem [resolvable:$false] %s4541_s15 }
 0x13e   : > { %v3990_v54 = vsel %vm300_vm6, %v3989_v9, %v3988_v32  ;;  %v3968_v55 = vsel %vm288_vm2, %v3967_v39, %v3966_v52  ;;  %672 = vst.msk [vmem:[%s5774_s18 + $0x38] sm:$0xff] %vm664_vm7, %v5468_v8  ;;  %671 = vst.msk [vmem:[%s5774_s18 + $0x30] sm:$0xff] %vm664_vm7, %v5479_v21  ;;  %p4539_p11 = pnand %p4538_p8, %p6000_p9  ;;  %s4543_s16 = scalar_lea.vmem %s4542_s15, 16384 }
 0x13f   : > { %4378 = vst.msk [vmem:[%s5774_s18 + $0x48] sm:$0xff] %vm664_vm7, %v5496_v47  ;;  %4377 = vst.msk [vmem:[%s5774_s18 + $0x40] sm:$0xff] %vm664_vm7, %v5504_v60  ;;  %4223 = vxpose.xlu1.b32.start.end [1/1] (short) (narrow) %v3990_v54, 8  ;;  %v3970_v28 = vsel %vm291_vm3, %v3969_v31, %v3968_v55  ;;  %v2187_v40 = vpop.trf.xlu1  ;;  %p4544_p10 = scmp.lt.s32.totalorder %s5941_s29, %s4542_s15  ;;  %p4545_p12 = scmp.lt.s32.totalorder %s4543_s16, %s4537_s13 }
 0x140   : > { %4380 = vst.msk [vmem:[%s5774_s18 + $0x58] sm:$0xff] %vm664_vm7, %v5521_v23  ;;  %4379 = vst.msk [vmem:[%s5774_s18 + $0x50] sm:$0xff] %vm664_vm7, %v5532_v37  ;;  %v3972_v63 = vsel %vm294_vm4, %v3971_v50, %v3970_v28  ;;  %p4540_p13 = pneg %p4539_p11 }
 0x141   : > { %4382 = vst.msk [vmem:[%s5774_s18 + $0x68] sm:$0xff] %vm664_vm7, %v5549_v1  ;;  %4381 = vst.msk [vmem:[%s5774_s18 + $0x60] sm:$0xff] %vm664_vm7, %v5557_v15  ;;  %v3974_v11 = vsel %vm297_vm5, %v3973_v53, %v3972_v63  ;;  %p4546_p1 = por %p4545_p12, %p4544_p10 }
 0x142   : > { %4384 = vst.msk [vmem:[%s5774_s18 + $0x78] sm:$0xff] %vm664_vm7, %v5574_v44  ;;  %4383 = vst.msk [vmem:[%s5774_s18 + $0x70] sm:$0xff] %vm664_vm7, %v5585_v58  ;;  %v3976_v35 = vsel %vm300_vm6, %v3975_v61, %v3974_v11 }
 0x143   : > { %4386 = vst.msk [vmem:[%s5774_s18 + $0x88] sm:$0xff] %vm664_vm7, %v5602_v25  ;;  %4385 = vst.msk [vmem:[%s5774_s18 + $0x80] sm:$0xff] %vm664_vm7, %v5610_v41  ;;  %4191 = vxpose.xlu0.b32.start.end [1/1] (short) (narrow) %v3976_v35, 8  ;;  %v2155_v48 = vpop.trf.xlu0  ;;  %p4547_p3 = pnand %p4546_p1, %p4540_p13 }
 0x144   : > { %4388 = vst.msk [vmem:[%s5774_s18 + $0x98] sm:$0xff] %vm664_vm7, %v5627_v7  ;;  %4387 = vst.msk [vmem:[%s5774_s18 + $0x90] sm:$0xff] %vm664_vm7, %v5638_v24 }
 0x145   : > { %4390 = vst.msk [vmem:[%s5774_s18 + $0xa8] sm:$0xff] %vm664_vm7, %v5655_v56  ;;  %4389 = vst.msk [vmem:[%s5774_s18 + $0xa0] sm:$0xff] %vm664_vm7, %v5663_v10 }
 0x146   : > { %4392 = vst.msk [vmem:[%s5774_s18 + $0xb8] sm:$0xff] %vm664_vm7, %v5680_v45  ;;  %4391 = vst.msk [vmem:[%s5774_s18 + $0xb0] sm:$0xff] %vm664_vm7, %v5691_v62 }
 0x147   : > { %4394 = vst.msk [vmem:[%s5774_s18 + $0xc8] sm:$0xff] %vm664_vm7, %v5708_v33  ;;  %4393 = vst.msk [vmem:[%s5774_s18 + $0xc0] sm:$0xff] %vm664_vm7, %v5716_v51  ;;  %v2508_v8 = vpop.trf.xlu1 }
 0x148   : > { %4396 = vst.msk [vmem:[%s5774_s18 + $0xd8] sm:$0xff] %vm664_vm7, %v5733_v20  ;;  %4395 = vst.msk [vmem:[%s5774_s18 + $0xd0] sm:$0xff] %vm664_vm7, %v5744_v49 }
 0x149   : > { %4398 = vst.msk [vmem:[%s5774_s18 + $0xe8] sm:$0xff] %vm664_vm7, %v2123_v22  ;;  %4397 = vst.msk [vmem:[%s5774_s18 + $0xe0] sm:$0xff] %vm664_vm7, %v2091_v42 }
 0x14a   : > { %4400 = vst.msk [vmem:[%s5774_s18 + $0xf8] sm:$0xff] %vm664_vm7, %v2187_v40  ;;  %4399 = vst.msk [vmem:[%s5774_s18 + $0xf0] sm:$0xff] %vm664_vm7, %v2155_v48 }
 0x14b   : > { %4402 = vst.msk [vmem:[%s5774_s18 + $0x108] sm:$0xff] %vm664_vm7, %v2508_v8  ;;  %v2476_v21 = vpop.trf.xlu0 }
 0x14c   : > { %4401 = vst.msk [vmem:[%s5774_s18 + $0x100] sm:$0xff] %vm664_vm7, %v2476_v21 }
 0x14f   : > { %v2572_v47 = vpop.trf.xlu1 }
 0x150   : > { %4404 = vst.msk [vmem:[%s5774_s18 + $0x118] sm:$0xff] %vm664_vm7, %v2572_v47 }
 0x153   : > { %v2540_v60 = vpop.trf.xlu0 }
 0x154   : > { %4403 = vst.msk [vmem:[%s5774_s18 + $0x110] sm:$0xff] %vm664_vm7, %v2540_v60 }
 0x157   : > { %v2636_v23 = vpop.trf.xlu1 }
 0x158   : > { %4406 = vst.msk [vmem:[%s5774_s18 + $0x128] sm:$0xff] %vm664_vm7, %v2636_v23 }
 0x15b   : > { %v2604_v37 = vpop.trf.xlu0 }
 0x15c   : > { %4405 = vst.msk [vmem:[%s5774_s18 + $0x120] sm:$0xff] %vm664_vm7, %v2604_v37 }
 0x15f   : > { %v2700_v1 = vpop.trf.xlu1 }
 0x160   : > { %4408 = vst.msk [vmem:[%s5774_s18 + $0x138] sm:$0xff] %vm664_vm7, %v2700_v1 }
 0x163   : > { %v2668_v15 = vpop.trf.xlu0 }
 0x164   : > { %4407 = vst.msk [vmem:[%s5774_s18 + $0x130] sm:$0xff] %vm664_vm7, %v2668_v15 }
 0x167   : > { %v3021_v44 = vpop.trf.xlu1 }
 0x168   : > { %4410 = vst.msk [vmem:[%s5774_s18 + $0x148] sm:$0xff] %vm664_vm7, %v3021_v44 }
 0x16b   : > { %v2989_v58 = vpop.trf.xlu0 }
 0x16c   : > { %4409 = vst.msk [vmem:[%s5774_s18 + $0x140] sm:$0xff] %vm664_vm7, %v2989_v58 }
 0x16f   : > { %v3085_v25 = vpop.trf.xlu1 }
 0x170   : > { %4412 = vst.msk [vmem:[%s5774_s18 + $0x158] sm:$0xff] %vm664_vm7, %v3085_v25 }
 0x173   : > { %v3053_v41 = vpop.trf.xlu0 }
 0x174   : > { %4411 = vst.msk [vmem:[%s5774_s18 + $0x150] sm:$0xff] %vm664_vm7, %v3053_v41 }
 0x177   : > { %v3149_v7 = vpop.trf.xlu1 }
 0x178   : > { %4414 = vst.msk [vmem:[%s5774_s18 + $0x168] sm:$0xff] %vm664_vm7, %v3149_v7 }
 0x17b   : > { %v3117_v24 = vpop.trf.xlu0 }
 0x17c   : > { %4413 = vst.msk [vmem:[%s5774_s18 + $0x160] sm:$0xff] %vm664_vm7, %v3117_v24 }
 0x17f   : > { %v3213_v56 = vpop.trf.xlu1 }
 0x180   : > { %4416 = vst.msk [vmem:[%s5774_s18 + $0x178] sm:$0xff] %vm664_vm7, %v3213_v56 }
 0x183   : > { %v3181_v10 = vpop.trf.xlu0 }
 0x184   : > { %4415 = vst.msk [vmem:[%s5774_s18 + $0x170] sm:$0xff] %vm664_vm7, %v3181_v10 }
 0x187   : > { %v3534_v45 = vpop.trf.xlu1 }
 0x188   : > { %4418 = vst.msk [vmem:[%s5774_s18 + $0x188] sm:$0xff] %vm664_vm7, %v3534_v45 }
 0x18b   : > { %v3502_v62 = vpop.trf.xlu0 }
 0x18c   : > { %4417 = vst.msk [vmem:[%s5774_s18 + $0x180] sm:$0xff] %vm664_vm7, %v3502_v62 }
 0x18f   : > { %v3598_v33 = vpop.trf.xlu1 }
 0x190   : > { %4420 = vst.msk [vmem:[%s5774_s18 + $0x198] sm:$0xff] %vm664_vm7, %v3598_v33 }
 0x193   : > { %v3566_v51 = vpop.trf.xlu0 }
 0x194   : > { %4419 = vst.msk [vmem:[%s5774_s18 + $0x190] sm:$0xff] %vm664_vm7, %v3566_v51 }
 0x197   : > { %v3662_v20 = vpop.trf.xlu1 }
 0x198   : > { %4422 = vst.msk [vmem:[%s5774_s18 + $0x1a8] sm:$0xff] %vm664_vm7, %v3662_v20 }
 0x19b   : > { %v3630_v49 = vpop.trf.xlu0 }
 0x19c   : > { %4421 = vst.msk [vmem:[%s5774_s18 + $0x1a0] sm:$0xff] %vm664_vm7, %v3630_v49 }
 0x19f   : > { %v3726_v57 = vpop.trf.xlu1 }
 0x1a0   : > { %4424 = vst.msk [vmem:[%s5774_s18 + $0x1b8] sm:$0xff] %vm664_vm7, %v3726_v57 }
 0x1a3   : > { %v3694_v0 = vpop.trf.xlu0 }
 0x1a4   : > { %4423 = vst.msk [vmem:[%s5774_s18 + $0x1b0] sm:$0xff] %vm664_vm7, %v3694_v0 }
 0x1a7   : > { %v4047_v2 = vpop.trf.xlu1 }
 0x1a8   : > { %4426 = vst.msk [vmem:[%s5774_s18 + $0x1c8] sm:$0xff] %vm664_vm7, %v4047_v2 }
 0x1ab   : > { %v4015_v3 = vpop.trf.xlu0 }
 0x1ac   : > { %4425 = vst.msk [vmem:[%s5774_s18 + $0x1c0] sm:$0xff] %vm664_vm7, %v4015_v3 }
 0x1af   : > { %v4111_v4 = vpop.trf.xlu1 }
 0x1b0   : > { %4428 = vst.msk [vmem:[%s5774_s18 + $0x1d8] sm:$0xff] %vm664_vm7, %v4111_v4 }
 0x1b3   : > { %v4079_v59 = vpop.trf.xlu0 }
 0x1b4   : > { %4427 = vst.msk [vmem:[%s5774_s18 + $0x1d0] sm:$0xff] %vm664_vm7, %v4079_v59 }
 0x1b7   : > { %v4175_v5 = vpop.trf.xlu1 }
 0x1b8   : > { %4430 = vst.msk [vmem:[%s5774_s18 + $0x1e8] sm:$0xff] %vm664_vm7, %v4175_v5 }
 0x1bb   : > { %v4143_v6 = vpop.trf.xlu0 }
 0x1bc   : > { %4429 = vst.msk [vmem:[%s5774_s18 + $0x1e0] sm:$0xff] %vm664_vm7, %v4143_v6 }
 0x1bf   : > { %v4239_v9 = vpop.trf.xlu1 }
 0x1c0   : > { %4432 = vst.msk [vmem:[%s5774_s18 + $0x1f8] sm:$0xff] %vm664_vm7, %v4239_v9 }
 0x1c3   : > { %v4207_v12 = vpop.trf.xlu0 }
 0x1c4   : > { %4431 = vst.msk [vmem:[%s5774_s18 + $0x1f0] sm:$0xff] %vm664_vm7, %v4207_v12 }
 0x1c5   : > { %4550 = shalt.err (!%p4547_p3)
}
 0x1c6   : > { %s4551_s17 = scalar_lea.hbm %s5939_s5, 8192  ;;  %s4555_s24 = scalar_lea.hbm %s5992_s1, 49152 }
 0x1c7   : > { %p4552_p4 = scmp.ne.s32.totalorder %s5939_s5, %s4551_s17  ;;  %p4556_p0 = scmp.lt.u32.totalorder %s5939_s5, %s5992_s1 }
 0x1c8   : > { %p4557_p2 = scmp.lt.u32.totalorder %s4555_s24, %s4551_s17  ;;  %p4559_p8 = scmp.lt.u32.totalorder %s4551_s17, %s5939_s5 }
 0x1c9   : > { %p4553_p6 = pnand %p4552_p4, %p6000_p9 }
 0x1ca   : > { %p4558_p5 = por %p4557_p2, %p4556_p0 }
 0x1cb   : > { %p4554_p7 = pneg %p4553_p6 }
 0x1cc   : > { %p4560_p11 = por %p4559_p8, %p4558_p5 }
 0x1ce   : > { %p4561_p13 = pnand %p4560_p11, %p4554_p7 }
 0x1d0   : > { %4564 = shalt.err (!%p4561_p13)
}
 0x1d1   : > { %s4625_s3 = smov 128   ;;  %s4626_s4 = smov 8  }
 0x1d2   : > { %4442 = dma.vmem_to_hbm [thread:$0]  (%p6000_p9), %s5941_s29, 8192, %s5939_s5, %s4265_s12, %s4625_s3, %s4625_s3, %s4626_s4  }
 0x1d3 PF: > { %p4453_p10 = scmp.ge.s32.totalorder %s4619_s11, 2  ;;  %s4296_s18 = sand.u32 1, %s4599_s6  }
 0x1d4   : > { %p6001_p12 = scmp.ne.s32.totalorder %s5997_s21, 0  ;;  %s4297_s27 = scalar_lea.sflag [#allocation4], %s4296_s18 }
 0x1d6   : > { %p4449_p1 = pnand %p4453_p10, %p6001_p12 }
 0x1d8   : > { %4594 = dma.done.wait (!%p4449_p1), %s4297_s27, 8192  }
 0x1d9   : > { %4596 = vsyncadd (!%p4449_p1), %s4297_s27, 4294959104  ;;  %s17_s11 = sadd.s32 1, %s4619_s11   ;;  %s6002_s6 = smov %s4603_s7 }
 0x1da   : > { %p14_p3 = scmp.ge.s32.totalorder %s17_s11, 8   ;;  %s6003_s7 = smov %s4607_s8 }
 0x1db   : > { %s6004_s8 = smov %s4693_s20  ;;  %s6005_s9 = smov %s4615_s10 }
 0x1dc   : > { %s6006_s10 = smov %s6008_s14  ;;  %16 = sbr.rel (!%p14_p3) target bundleno = 6 (0x6), region = 76 }
 0x1e3   :  { %4302 = vsyncpa [#allocation3], 1 }
 0x1e4   :  { %4304 = vsyncpa [#allocation3 + $0x1], 1 }
 0x1e5   :  { %4305 = vsyncpa [#allocation4], 1 }
 0x1e6   :  { %4307 = vsyncpa [#allocation4 + $0x1], 1 }

</bundles_post_ra>
